<compile_context>
chip_gen: v7x
topology: tpu7x:2x2x1
jax: 0.10.0
libtpu: 0.0.40
codegen_flags: <defaults>
</compile_context>

<pallas_src>
import functools

import jax
import jax.numpy as jnp
from jax.experimental import pallas as pl
from jax.experimental.pallas import tpu as pltpu

EPS = 1e-5


def _basic_block_kernel(x_ref, wb1_ref, wb2_ref, g1_ref, b1_ref, g2_ref, b2_ref,
                        fold_ref, unfold_ref, out_ref,
                        xp_ref, hp_ref, acc1_ref, acc2_ref, *, W):
    """Fused BasicBlock: conv1 -> bn1 -> relu -> conv2 -> bn2 -> (+x) -> relu.

    x_ref     : (N, H, W*Cin)        input slab (lane-dense), native dtype
    wb1_ref   : (3, W*Cin,  W*Cout)  banded conv1 weights (bf16), one per kh
    wb2_ref   : (3, W*Cout, W*Cout)  banded conv2 weights (bf16)
    g*/b*     : (1, Cout)            BN scale / shift (f32)
    fold_ref  : (W*Cout, Cout)       lane -> channel reducer (0/1 matrix)
    unfold_ref: (Cout, W*Cout)       channel -> lane broadcaster
    out_ref   : (N, H, W*Cout)       output slab
    xp_ref    : (N, H+2, W*Cin)      scratch: H-padded bf16 MXU lhs (stage 1)
    hp_ref    : (N, H+2, W*Cout)     scratch: H-padded bf16 MXU lhs (stage 2)
    acc1/acc2 : (N, H, W*Cout)       scratch: f32 conv accumulators
    """
    N, H, WCi = x_ref.shape
    WCo = out_ref.shape[-1]
    inv_n = 1.0 / float(N * H * W)

    fold = fold_ref[...]
    unfold = unfold_ref[...]

    def col_sum(v):  # (N, H, WCo) -> (1, WCo): leading-dim add, then sublane reduce
        return jnp.sum(jnp.sum(v, axis=0), axis=0, keepdims=True)

    def bn_train(acc, gamma, beta):
        """Training-mode BatchNorm over (N,H,W) per channel, two-pass variance."""
        mean_c = jnp.dot(col_sum(acc), fold,
                         preferred_element_type=jnp.float32) * inv_n          # (1, Cout)
        mean_l = jnp.dot(mean_c, unfold, preferred_element_type=jnp.float32)  # (1, WCo)
        centered = acc - mean_l
        var_c = jnp.dot(col_sum(centered * centered), fold,
                        preferred_element_type=jnp.float32) * inv_n           # (1, Cout)
        scale_c = jax.lax.rsqrt(var_c + EPS) * gamma
        scale_l = jnp.dot(scale_c, unfold, preferred_element_type=jnp.float32)
        shift_l = jnp.dot(beta - mean_c * scale_c, unfold,
                          preferred_element_type=jnp.float32)
        return acc * scale_l + shift_l

    def conv3x3_banded(src_ref, wb_ref, dst_ref):
        """dst[n, h, :] = sum_kh src[n, h+kh, :] @ wb[kh]; src carries the H halo,
        the W halo / kw taps are folded into the banded weights."""
        w_taps = [wb_ref[kh] for kh in range(3)]          # hoisted weight loads
        for n in range(N):                                # static, tiny N
            acc = jnp.dot(src_ref[n, 0:H, :], w_taps[0],
                          preferred_element_type=jnp.float32)
            acc = acc + jnp.dot(src_ref[n, 1:H + 1, :], w_taps[1],
                                preferred_element_type=jnp.float32)
            acc = acc + jnp.dot(src_ref[n, 2:H + 2, :], w_taps[2],
                                preferred_element_type=jnp.float32)
            dst_ref[n] = acc

    # ---------------- stage 1: conv3x3(x) -> bn1 -> relu ----------------
    xp_ref[:, 1:H + 1, :] = x_ref[...].astype(xp_ref.dtype)          # interior (bf16)
    xp_ref[:, 0:1, :] = jnp.zeros((N, 1, WCi), xp_ref.dtype)         # zero only the
    xp_ref[:, H + 1:H + 2, :] = jnp.zeros((N, 1, WCi), xp_ref.dtype)  # 1-row halos
    conv3x3_banded(xp_ref, wb1_ref, acc1_ref)
    h = jnp.maximum(bn_train(acc1_ref[...], g1_ref[...], b1_ref[...]), 0.0)

    # ------------- stage 2: conv3x3(h) -> bn2 -> (+x) -> relu -----------
    hp_ref[:, 1:H + 1, :] = h.astype(hp_ref.dtype)
    hp_ref[:, 0:1, :] = jnp.zeros((N, 1, WCo), hp_ref.dtype)
    hp_ref[:, H + 1:H + 2, :] = jnp.zeros((N, 1, WCo), hp_ref.dtype)
    conv3x3_banded(hp_ref, wb2_ref, acc2_ref)
    y = bn_train(acc2_ref[...], g2_ref[...], b2_ref[...])

    # residual add (downsample=None -> identity = x, Cin == Cout) + final relu
    y = jnp.maximum(y + x_ref[...].astype(jnp.float32), 0.0)
    out_ref[...] = y.astype(out_ref.dtype)


def _make_banded_weights(w_hwio, W):
    """HWIO (3,3,Ci,Co) -> (3, W*Ci, W*Co) per-kh banded matrices over width.

    band[kh, ws*Ci + ci, wo*Co + co] = w_hwio[kh, kw, ci, co] with ws = wo+kw-1;
    taps falling outside [0, W) (the width padding) are simply omitted.
    """
    KH, KW, Ci, Co = w_hwio.shape
    wo = jnp.arange(W)
    band = jnp.zeros((KH, W, Ci, W, Co), w_hwio.dtype)
    for kw in range(KW):
        ws = wo + kw - 1
        valid = ((ws >= 0) & (ws < W)).astype(w_hwio.dtype)
        sel = jnp.zeros((W, W), w_hwio.dtype).at[jnp.clip(ws, 0, W - 1), wo].add(valid)
        band = band + jnp.einsum("sw,kic->ksiwc", sel, w_hwio[:, kw])
    return band.reshape(KH, W * Ci, W * Co)


def basic_block_forward(x_nchw, params):
    """BasicBlock forward (stride=1, downsample=None). NCHW in/out like PyTorch."""
    x = jnp.transpose(x_nchw, (0, 2, 3, 1))                      # NCHW -> NHWC
    N, H, W, Cin = x.shape
    Cout = params["w1"].shape[-1]
    assert Cin == Cout, "downsample=None requires inplanes == planes"

    x2 = x.reshape(N, H, W * Cin)                                 # lane-dense slab
    wb1 = _make_banded_weights(params["w1"], W).astype(jnp.bfloat16)
    wb2 = _make_banded_weights(params["w2"], W).astype(jnp.bfloat16)
    g1 = params["g1"].reshape(1, Cout).astype(jnp.float32)
    b1 = params["b1"].reshape(1, Cout).astype(jnp.float32)
    g2 = params["g2"].reshape(1, Cout).astype(jnp.float32)
    b2 = params["b2"].reshape(1, Cout).astype(jnp.float32)

    # lane <-> channel fold matrices: lane l of the W*Cout dim holds channel l % Cout.
    ch_of_lane = jnp.tile(jnp.arange(Cout), W)                    # (W*Cout,)
    fold = (ch_of_lane[:, None] == jnp.arange(Cout)[None, :]).astype(jnp.float32)
    unfold = fold.T

    vmem = pl.BlockSpec(memory_space=pltpu.MemorySpace.VMEM)
    kernel = functools.partial(_basic_block_kernel, W=W)
    out2 = pl.pallas_call(
        kernel,
        out_shape=jax.ShapeDtypeStruct((N, H, W * Cout), x.dtype),
        in_specs=[vmem] * 9,
        out_specs=vmem,
        scratch_shapes=[
            pltpu.VMEM((N, H + 2, W * Cin), jnp.bfloat16),    # H-padded x (MXU lhs)
            pltpu.VMEM((N, H + 2, W * Cout), jnp.bfloat16),   # H-padded stage-1 act
            pltpu.VMEM((N, H, W * Cout), jnp.float32),        # conv1 accumulator
            pltpu.VMEM((N, H, W * Cout), jnp.float32),        # conv2 accumulator
        ],
        # Footprint is well under the default scoped-VMEM limit on v5e/v6e/v7x,
        # so no vmem_limit_bytes override is needed here.
    )(x2, wb1, wb2, g1, b1, g2, b2, fold, unfold)

    out = out2.reshape(N, H, W, Cout)
    return jnp.transpose(out, (0, 3, 1, 2))                       # NHWC -> NCHW


def init_params(key, inplanes, planes):
    """Deterministic synthetic parameters matching BasicBlock(inplanes, planes)."""
    k1, k2 = jax.random.split(key)
    # conv3x3 weights: PyTorch OIHW (Co,Ci,3,3) -> HWIO (3,3,Ci,Co)
    w1_oihw = jax.random.normal(k1, (planes, inplanes, 3, 3), jnp.float32) * 0.1
    w2_oihw = jax.random.normal(k2, (planes, planes, 3, 3), jnp.float32) * 0.1
    return {
        "w1": jnp.transpose(w1_oihw, (2, 3, 1, 0)),
        "w2": jnp.transpose(w2_oihw, (2, 3, 1, 0)),
        "g1": jnp.ones((planes,), jnp.float32),    # BN default init: weight=1
        "b1": jnp.zeros((planes,), jnp.float32),   #                  bias=0
        "g2": jnp.ones((planes,), jnp.float32),
        "b2": jnp.zeros((planes,), jnp.float32),
    }


# ---------------------- pure-JAX reference (for checking) -------------------
def _bn_ref(x, gamma, beta):
    mean = jnp.mean(x, axis=(0, 1, 2), keepdims=True)
    var = jnp.mean((x - mean) ** 2, axis=(0, 1, 2), keepdims=True)
    return (x - mean) * jax.lax.rsqrt(var + EPS) * gamma + beta


def ref_forward(x_nchw, params):
    x = jnp.transpose(x_nchw, (0, 2, 3, 1))
    dn = ("NHWC", "HWIO", "NHWC")
    h = jax.lax.conv_general_dilated(x, params["w1"], (1, 1), "SAME",
                                     dimension_numbers=dn,
                                     precision=jax.lax.Precision.HIGHEST)
    h = jnp.maximum(_bn_ref(h, params["g1"], params["b1"]), 0.0)
    y = jax.lax.conv_general_dilated(h, params["w2"], (1, 1), "SAME",
                                     dimension_numbers=dn,
                                     precision=jax.lax.Precision.HIGHEST)
    y = _bn_ref(y, params["g2"], params["b2"])
    y = jnp.maximum(y + x, 0.0)
    return jnp.transpose(y, (0, 3, 1, 2))


if __name__ == "__main__":
    # Small shapes consistent with BasicBlock(inplanes=4, planes=4, stride=1).
    N, C, Hs, Ws = 2, 4, 16, 16
    key = jax.random.PRNGKey(0)
    kx, kp = jax.random.split(key)

    x = jax.random.normal(kx, (N, C, Hs, Ws), jnp.float32)        # NCHW like PyTorch
    params = init_params(kp, inplanes=C, planes=C)

    out = jax.block_until_ready(basic_block_forward(x, params))
    ref = jax.block_until_ready(ref_forward(x, params))

    assert out.shape == (N, C, Hs, Ws)
    assert bool(jnp.all(out >= 0.0))                              # final relu
    # Tolerance accounts for the (intentional) bf16 MXU operands vs f32 reference.
    max_err = float(jnp.max(jnp.abs(out - ref)))
    assert bool(jnp.allclose(out, ref, atol=5e-2, rtol=5e-2)), max_err
    print("KERNEL_OK")
</pallas_src>

<mosaic_0001>
module attributes {stable_mosaic.version = 11 : i64} {
  func.func @_basic_block_kernel(%arg0: memref<2x16x64xf32, #tpu.memory_space<vmem>>, %arg1: memref<3x64x64xbf16, #tpu.memory_space<vmem>>, %arg2: memref<3x64x64xbf16, #tpu.memory_space<vmem>>, %arg3: memref<1x4xf32, #tpu.memory_space<vmem>>, %arg4: memref<1x4xf32, #tpu.memory_space<vmem>>, %arg5: memref<1x4xf32, #tpu.memory_space<vmem>>, %arg6: memref<1x4xf32, #tpu.memory_space<vmem>>, %arg7: memref<64x4xf32, #tpu.memory_space<vmem>>, %arg8: memref<4x64xf32, #tpu.memory_space<vmem>>, %arg9: memref<2x16x64xf32, #tpu.memory_space<vmem>>, %arg10: memref<2x18x64xbf16, #tpu.memory_space<vmem>>, %arg11: memref<2x18x64xbf16, #tpu.memory_space<vmem>>, %arg12: memref<2x16x64xf32, #tpu.memory_space<vmem>>, %arg13: memref<2x16x64xf32, #tpu.memory_space<vmem>>) attributes {dimension_semantics = [], scalar_prefetch = 0 : i64, scratch_operands = 4 : i64, tpu.core_type = #tpu.core_type<tc>} {
    %c0 = arith.constant 0 : index
    %c0_0 = arith.constant 0 : index
    %0 = vector.load %arg7[%c0, %c0_0] : memref<64x4xf32, #tpu.memory_space<vmem>>, vector<64x4xf32>
    %c0_1 = arith.constant 0 : index
    %c0_2 = arith.constant 0 : index
    %1 = vector.load %arg8[%c0_1, %c0_2] : memref<4x64xf32, #tpu.memory_space<vmem>>, vector<4x64xf32>
    %c0_3 = arith.constant 0 : index
    %c0_4 = arith.constant 0 : index
    %c0_5 = arith.constant 0 : index
    %2 = vector.load %arg0[%c0_3, %c0_4, %c0_5] : memref<2x16x64xf32, #tpu.memory_space<vmem>>, vector<2x16x64xf32>
    %3 = arith.truncf %2 : vector<2x16x64xf32> to vector<2x16x64xbf16>
    %c0_6 = arith.constant 0 : index
    %c1 = arith.constant 1 : index
    %c0_7 = arith.constant 0 : index
    %4 = vector.load %arg10[%c0_6, %c1, %c0_7] : memref<2x18x64xbf16, #tpu.memory_space<vmem>>, vector<2x16x64xbf16>
    tpu.vector_store %arg10[%c0_6, %c1, %c0_7], %3 {strides = array<i32>} : memref<2x18x64xbf16, #tpu.memory_space<vmem>>, vector<2x16x64xbf16>,
    %cst = arith.constant 0.000000e+00 : bf16
    %5 = vector.broadcast %cst : bf16 to vector<2x1x64xbf16>
    %c0_8 = arith.constant 0 : index
    %c0_9 = arith.constant 0 : index
    %c0_10 = arith.constant 0 : index
    %6 = vector.load %arg10[%c0_8, %c0_9, %c0_10] : memref<2x18x64xbf16, #tpu.memory_space<vmem>>, vector<2x1x64xbf16>
    tpu.vector_store %arg10[%c0_8, %c0_9, %c0_10], %5 {strides = array<i32>} : memref<2x18x64xbf16, #tpu.memory_space<vmem>>, vector<2x1x64xbf16>,
    %cst_11 = arith.constant 0.000000e+00 : bf16
    %7 = vector.broadcast %cst_11 : bf16 to vector<2x1x64xbf16>
    %c0_12 = arith.constant 0 : index
    %c17 = arith.constant 17 : index
    %c0_13 = arith.constant 0 : index
    %8 = vector.load %arg10[%c0_12, %c17, %c0_13] : memref<2x18x64xbf16, #tpu.memory_space<vmem>>, vector<2x1x64xbf16>
    tpu.vector_store %arg10[%c0_12, %c17, %c0_13], %7 {strides = array<i32>} : memref<2x18x64xbf16, #tpu.memory_space<vmem>>, vector<2x1x64xbf16>,
    %c0_14 = arith.constant 0 : index
    %c0_15 = arith.constant 0 : index
    %c0_16 = arith.constant 0 : index
    %9 = vector.load %arg1[%c0_14, %c0_15, %c0_16] : memref<3x64x64xbf16, #tpu.memory_space<vmem>>, vector<1x64x64xbf16>
    %10 = vector.shape_cast %9 : vector<1x64x64xbf16> to vector<64x64xbf16>
    %c1_17 = arith.constant 1 : index
    %c0_18 = arith.constant 0 : index
    %c0_19 = arith.constant 0 : index
    %11 = vector.load %arg1[%c1_17, %c0_18, %c0_19] : memref<3x64x64xbf16, #tpu.memory_space<vmem>>, vector<1x64x64xbf16>
    %12 = vector.shape_cast %11 : vector<1x64x64xbf16> to vector<64x64xbf16>
    %c2 = arith.constant 2 : index
    %c0_20 = arith.constant 0 : index
    %c0_21 = arith.constant 0 : index
    %13 = vector.load %arg1[%c2, %c0_20, %c0_21] : memref<3x64x64xbf16, #tpu.memory_space<vmem>>, vector<1x64x64xbf16>
    %14 = vector.shape_cast %13 : vector<1x64x64xbf16> to vector<64x64xbf16>
    %c0_22 = arith.constant 0 : index
    %c0_23 = arith.constant 0 : index
    %c0_24 = arith.constant 0 : index
    %15 = vector.load %arg10[%c0_22, %c0_23, %c0_24] : memref<2x18x64xbf16, #tpu.memory_space<vmem>>, vector<1x16x64xbf16>
    %16 = vector.shape_cast %15 : vector<1x16x64xbf16> to vector<16x64xbf16>
    %cst_25 = arith.constant dense<0.000000e+00> : vector<16x64xf32>
    %17 = tpu.matmul %16, %10, %cst_25 {dimension_numbers = #tpu.dot_dimension_numbers<[1], [0], [0], [1], [0, 0, 1, 1], [], []>} : vector<16x64xbf16>, vector<64x64xbf16>, vector<16x64xf32> -> vector<16x64xf32>
    %c0_26 = arith.constant 0 : index
    %c1_27 = arith.constant 1 : index
    %c0_28 = arith.constant 0 : index
    %18 = vector.load %arg10[%c0_26, %c1_27, %c0_28] : memref<2x18x64xbf16, #tpu.memory_space<vmem>>, vector<1x16x64xbf16>
    %19 = vector.shape_cast %18 : vector<1x16x64xbf16> to vector<16x64xbf16>
    %cst_29 = arith.constant dense<0.000000e+00> : vector<16x64xf32>
    %20 = tpu.matmul %19, %12, %cst_29 {dimension_numbers = #tpu.dot_dimension_numbers<[1], [0], [0], [1], [0, 0, 1, 1], [], []>} : vector<16x64xbf16>, vector<64x64xbf16>, vector<16x64xf32> -> vector<16x64xf32>
    %21 = arith.addf %17, %20 : vector<16x64xf32>
    %c0_30 = arith.constant 0 : index
    %c2_31 = arith.constant 2 : index
    %c0_32 = arith.constant 0 : index
    %22 = vector.load %arg10[%c0_30, %c2_31, %c0_32] : memref<2x18x64xbf16, #tpu.memory_space<vmem>>, vector<1x16x64xbf16>
    %23 = vector.shape_cast %22 : vector<1x16x64xbf16> to vector<16x64xbf16>
    %cst_33 = arith.constant dense<0.000000e+00> : vector<16x64xf32>
    %24 = tpu.matmul %23, %14, %cst_33 {dimension_numbers = #tpu.dot_dimension_numbers<[1], [0], [0], [1], [0, 0, 1, 1], [], []>} : vector<16x64xbf16>, vector<64x64xbf16>, vector<16x64xf32> -> vector<16x64xf32>
    %25 = arith.addf %21, %24 : vector<16x64xf32>
    %c0_34 = arith.constant 0 : index
    %c0_35 = arith.constant 0 : index
    %c0_36 = arith.constant 0 : index
    %26 = vector.load %arg12[%c0_34, %c0_35, %c0_36] : memref<2x16x64xf32, #tpu.memory_space<vmem>>, vector<1x16x64xf32>
    %27 = vector.shape_cast %26 : vector<1x16x64xf32> to vector<16x64xf32>
    %28 = vector.shape_cast %25 : vector<16x64xf32> to vector<1x16x64xf32>
    tpu.vector_store %arg12[%c0_34, %c0_35, %c0_36], %28 {strides = array<i32>} : memref<2x16x64xf32, #tpu.memory_space<vmem>>, vector<1x16x64xf32>,
    %c1_37 = arith.constant 1 : index
    %c0_38 = arith.constant 0 : index
    %c0_39 = arith.constant 0 : index
    %29 = vector.load %arg10[%c1_37, %c0_38, %c0_39] : memref<2x18x64xbf16, #tpu.memory_space<vmem>>, vector<1x16x64xbf16>
    %30 = vector.shape_cast %29 : vector<1x16x64xbf16> to vector<16x64xbf16>
    %cst_40 = arith.constant dense<0.000000e+00> : vector<16x64xf32>
    %31 = tpu.matmul %30, %10, %cst_40 {dimension_numbers = #tpu.dot_dimension_numbers<[1], [0], [0], [1], [0, 0, 1, 1], [], []>} : vector<16x64xbf16>, vector<64x64xbf16>, vector<16x64xf32> -> vector<16x64xf32>
    %c1_41 = arith.constant 1 : index
    %c1_42 = arith.constant 1 : index
    %c0_43 = arith.constant 0 : index
    %32 = vector.load %arg10[%c1_41, %c1_42, %c0_43] : memref<2x18x64xbf16, #tpu.memory_space<vmem>>, vector<1x16x64xbf16>
    %33 = vector.shape_cast %32 : vector<1x16x64xbf16> to vector<16x64xbf16>
    %cst_44 = arith.constant dense<0.000000e+00> : vector<16x64xf32>
    %34 = tpu.matmul %33, %12, %cst_44 {dimension_numbers = #tpu.dot_dimension_numbers<[1], [0], [0], [1], [0, 0, 1, 1], [], []>} : vector<16x64xbf16>, vector<64x64xbf16>, vector<16x64xf32> -> vector<16x64xf32>
    %35 = arith.addf %31, %34 : vector<16x64xf32>
    %c1_45 = arith.constant 1 : index
    %c2_46 = arith.constant 2 : index
    %c0_47 = arith.constant 0 : index
    %36 = vector.load %arg10[%c1_45, %c2_46, %c0_47] : memref<2x18x64xbf16, #tpu.memory_space<vmem>>, vector<1x16x64xbf16>
    %37 = vector.shape_cast %36 : vector<1x16x64xbf16> to vector<16x64xbf16>
    %cst_48 = arith.constant dense<0.000000e+00> : vector<16x64xf32>
    %38 = tpu.matmul %37, %14, %cst_48 {dimension_numbers = #tpu.dot_dimension_numbers<[1], [0], [0], [1], [0, 0, 1, 1], [], []>} : vector<16x64xbf16>, vector<64x64xbf16>, vector<16x64xf32> -> vector<16x64xf32>
    %39 = arith.addf %35, %38 : vector<16x64xf32>
    %c1_49 = arith.constant 1 : index
    %c0_50 = arith.constant 0 : index
    %c0_51 = arith.constant 0 : index
    %40 = vector.load %arg12[%c1_49, %c0_50, %c0_51] : memref<2x16x64xf32, #tpu.memory_space<vmem>>, vector<1x16x64xf32>
    %41 = vector.shape_cast %40 : vector<1x16x64xf32> to vector<16x64xf32>
    %42 = vector.shape_cast %39 : vector<16x64xf32> to vector<1x16x64xf32>
    tpu.vector_store %arg12[%c1_49, %c0_50, %c0_51], %42 {strides = array<i32>} : memref<2x16x64xf32, #tpu.memory_space<vmem>>, vector<1x16x64xf32>,
    %c0_52 = arith.constant 0 : index
    %c0_53 = arith.constant 0 : index
    %c0_54 = arith.constant 0 : index
    %43 = vector.load %arg12[%c0_52, %c0_53, %c0_54] : memref<2x16x64xf32, #tpu.memory_space<vmem>>, vector<2x16x64xf32>
    %c0_55 = arith.constant 0 : index
    %c0_56 = arith.constant 0 : index
    %44 = vector.load %arg3[%c0_55, %c0_56] : memref<1x4xf32, #tpu.memory_space<vmem>>, vector<1x4xf32>
    %c0_57 = arith.constant 0 : index
    %c0_58 = arith.constant 0 : index
    %45 = vector.load %arg4[%c0_57, %c0_58] : memref<1x4xf32, #tpu.memory_space<vmem>>, vector<1x4xf32>
    %cst_59 = arith.constant dense<0.000000e+00> : vector<16x64xf32>
    %46 = vector.multi_reduction <add>, %43, %cst_59 [0] : vector<2x16x64xf32> to vector<16x64xf32>
    %cst_60 = arith.constant dense<0.000000e+00> : vector<64xf32>
    %47 = vector.multi_reduction <add>, %46, %cst_60 [0] : vector<16x64xf32> to vector<64xf32>
    %48 = vector.shape_cast %47 : vector<64xf32> to vector<1x64xf32>
    %cst_61 = arith.constant dense<0.000000e+00> : vector<1x4xf32>
    %49 = tpu.matmul %48, %0, %cst_61 {dimension_numbers = #tpu.dot_dimension_numbers<[1], [0], [0], [1], [0, 0, 1, 1], [], []>} : vector<1x64xf32>, vector<64x4xf32>, vector<1x4xf32> -> vector<1x4xf32>
    %cst_62 = arith.constant 0.001953125 : f32
    %50 = vector.broadcast %cst_62 : f32 to vector<1x4xf32>
    %51 = arith.mulf %49, %50 : vector<1x4xf32>
    %cst_63 = arith.constant dense<0.000000e+00> : vector<1x64xf32>
    %52 = tpu.matmul %51, %1, %cst_63 {dimension_numbers = #tpu.dot_dimension_numbers<[1], [0], [0], [1], [0, 0, 1, 1], [], []>} : vector<1x4xf32>, vector<4x64xf32>, vector<1x64xf32> -> vector<1x64xf32>
    %53 = vector.shape_cast %52 : vector<1x64xf32> to vector<1x1x64xf32>
    %54 = vector.broadcast %53 : vector<1x1x64xf32> to vector<2x16x64xf32>
    %55 = arith.subf %43, %54 : vector<2x16x64xf32>
    %56 = arith.mulf %55, %55 : vector<2x16x64xf32>
    %cst_64 = arith.constant dense<0.000000e+00> : vector<16x64xf32>
    %57 = vector.multi_reduction <add>, %56, %cst_64 [0] : vector<2x16x64xf32> to vector<16x64xf32>
    %cst_65 = arith.constant dense<0.000000e+00> : vector<64xf32>
    %58 = vector.multi_reduction <add>, %57, %cst_65 [0] : vector<16x64xf32> to vector<64xf32>
    %59 = vector.shape_cast %58 : vector<64xf32> to vector<1x64xf32>
    %cst_66 = arith.constant dense<0.000000e+00> : vector<1x4xf32>
    %60 = tpu.matmul %59, %0, %cst_66 {dimension_numbers = #tpu.dot_dimension_numbers<[1], [0], [0], [1], [0, 0, 1, 1], [], []>} : vector<1x64xf32>, vector<64x4xf32>, vector<1x4xf32> -> vector<1x4xf32>
    %cst_67 = arith.constant 0.001953125 : f32
    %61 = vector.broadcast %cst_67 : f32 to vector<1x4xf32>
    %62 = arith.mulf %60, %61 : vector<1x4xf32>
    %cst_68 = arith.constant 9.99999974E-6 : f32
    %63 = vector.broadcast %cst_68 : f32 to vector<1x4xf32>
    %64 = arith.addf %62, %63 : vector<1x4xf32>
    %65 = math.rsqrt %64 : vector<1x4xf32>
    %66 = arith.mulf %65, %44 : vector<1x4xf32>
    %cst_69 = arith.constant dense<0.000000e+00> : vector<1x64xf32>
    %67 = tpu.matmul %66, %1, %cst_69 {dimension_numbers = #tpu.dot_dimension_numbers<[1], [0], [0], [1], [0, 0, 1, 1], [], []>} : vector<1x4xf32>, vector<4x64xf32>, vector<1x64xf32> -> vector<1x64xf32>
    %68 = arith.mulf %51, %66 : vector<1x4xf32>
    %69 = arith.subf %45, %68 : vector<1x4xf32>
    %cst_70 = arith.constant dense<0.000000e+00> : vector<1x64xf32>
    %70 = tpu.matmul %69, %1, %cst_70 {dimension_numbers = #tpu.dot_dimension_numbers<[1], [0], [0], [1], [0, 0, 1, 1], [], []>} : vector<1x4xf32>, vector<4x64xf32>, vector<1x64xf32> -> vector<1x64xf32>
    %71 = vector.shape_cast %67 : vector<1x64xf32> to vector<1x1x64xf32>
    %72 = vector.broadcast %71 : vector<1x1x64xf32> to vector<2x16x64xf32>
    %73 = arith.mulf %43, %72 : vector<2x16x64xf32>
    %74 = vector.shape_cast %70 : vector<1x64xf32> to vector<1x1x64xf32>
    %75 = vector.broadcast %74 : vector<1x1x64xf32> to vector<2x16x64xf32>
    %76 = arith.addf %73, %75 : vector<2x16x64xf32>
    %cst_71 = arith.constant 0.000000e+00 : f32
    %77 = vector.broadcast %cst_71 : f32 to vector<2x16x64xf32>
    %78 = arith.maximumf %76, %77 : vector<2x16x64xf32>
    %79 = arith.truncf %78 : vector<2x16x64xf32> to vector<2x16x64xbf16>
    %c0_72 = arith.constant 0 : index
    %c1_73 = arith.constant 1 : index
    %c0_74 = arith.constant 0 : index
    %80 = vector.load %arg11[%c0_72, %c1_73, %c0_74] : memref<2x18x64xbf16, #tpu.memory_space<vmem>>, vector<2x16x64xbf16>
    tpu.vector_store %arg11[%c0_72, %c1_73, %c0_74], %79 {strides = array<i32>} : memref<2x18x64xbf16, #tpu.memory_space<vmem>>, vector<2x16x64xbf16>,
    %cst_75 = arith.constant 0.000000e+00 : bf16
    %81 = vector.broadcast %cst_75 : bf16 to vector<2x1x64xbf16>
    %c0_76 = arith.constant 0 : index
    %c0_77 = arith.constant 0 : index
    %c0_78 = arith.constant 0 : index
    %82 = vector.load %arg11[%c0_76, %c0_77, %c0_78] : memref<2x18x64xbf16, #tpu.memory_space<vmem>>, vector<2x1x64xbf16>
    tpu.vector_store %arg11[%c0_76, %c0_77, %c0_78], %81 {strides = array<i32>} : memref<2x18x64xbf16, #tpu.memory_space<vmem>>, vector<2x1x64xbf16>,
    %cst_79 = arith.constant 0.000000e+00 : bf16
    %83 = vector.broadcast %cst_79 : bf16 to vector<2x1x64xbf16>
    %c0_80 = arith.constant 0 : index
    %c17_81 = arith.constant 17 : index
    %c0_82 = arith.constant 0 : index
    %84 = vector.load %arg11[%c0_80, %c17_81, %c0_82] : memref<2x18x64xbf16, #tpu.memory_space<vmem>>, vector<2x1x64xbf16>
    tpu.vector_store %arg11[%c0_80, %c17_81, %c0_82], %83 {strides = array<i32>} : memref<2x18x64xbf16, #tpu.memory_space<vmem>>, vector<2x1x64xbf16>,
    %c0_83 = arith.constant 0 : index
    %c0_84 = arith.constant 0 : index
    %c0_85 = arith.constant 0 : index
    %85 = vector.load %arg2[%c0_83, %c0_84, %c0_85] : memref<3x64x64xbf16, #tpu.memory_space<vmem>>, vector<1x64x64xbf16>
    %86 = vector.shape_cast %85 : vector<1x64x64xbf16> to vector<64x64xbf16>
    %c1_86 = arith.constant 1 : index
    %c0_87 = arith.constant 0 : index
    %c0_88 = arith.constant 0 : index
    %87 = vector.load %arg2[%c1_86, %c0_87, %c0_88] : memref<3x64x64xbf16, #tpu.memory_space<vmem>>, vector<1x64x64xbf16>
    %88 = vector.shape_cast %87 : vector<1x64x64xbf16> to vector<64x64xbf16>
    %c2_89 = arith.constant 2 : index
    %c0_90 = arith.constant 0 : index
    %c0_91 = arith.constant 0 : index
    %89 = vector.load %arg2[%c2_89, %c0_90, %c0_91] : memref<3x64x64xbf16, #tpu.memory_space<vmem>>, vector<1x64x64xbf16>
    %90 = vector.shape_cast %89 : vector<1x64x64xbf16> to vector<64x64xbf16>
    %c0_92 = arith.constant 0 : index
    %c0_93 = arith.constant 0 : index
    %c0_94 = arith.constant 0 : index
    %91 = vector.load %arg11[%c0_92, %c0_93, %c0_94] : memref<2x18x64xbf16, #tpu.memory_space<vmem>>, vector<1x16x64xbf16>
    %92 = vector.shape_cast %91 : vector<1x16x64xbf16> to vector<16x64xbf16>
    %cst_95 = arith.constant dense<0.000000e+00> : vector<16x64xf32>
    %93 = tpu.matmul %92, %86, %cst_95 {dimension_numbers = #tpu.dot_dimension_numbers<[1], [0], [0], [1], [0, 0, 1, 1], [], []>} : vector<16x64xbf16>, vector<64x64xbf16>, vector<16x64xf32> -> vector<16x64xf32>
    %c0_96 = arith.constant 0 : index
    %c1_97 = arith.constant 1 : index
    %c0_98 = arith.constant 0 : index
    %94 = vector.load %arg11[%c0_96, %c1_97, %c0_98] : memref<2x18x64xbf16, #tpu.memory_space<vmem>>, vector<1x16x64xbf16>
    %95 = vector.shape_cast %94 : vector<1x16x64xbf16> to vector<16x64xbf16>
    %cst_99 = arith.constant dense<0.000000e+00> : vector<16x64xf32>
    %96 = tpu.matmul %95, %88, %cst_99 {dimension_numbers = #tpu.dot_dimension_numbers<[1], [0], [0], [1], [0, 0, 1, 1], [], []>} : vector<16x64xbf16>, vector<64x64xbf16>, vector<16x64xf32> -> vector<16x64xf32>
    %97 = arith.addf %93, %96 : vector<16x64xf32>
    %c0_100 = arith.constant 0 : index
    %c2_101 = arith.constant 2 : index
    %c0_102 = arith.constant 0 : index
    %98 = vector.load %arg11[%c0_100, %c2_101, %c0_102] : memref<2x18x64xbf16, #tpu.memory_space<vmem>>, vector<1x16x64xbf16>
    %99 = vector.shape_cast %98 : vector<1x16x64xbf16> to vector<16x64xbf16>
    %cst_103 = arith.constant dense<0.000000e+00> : vector<16x64xf32>
    %100 = tpu.matmul %99, %90, %cst_103 {dimension_numbers = #tpu.dot_dimension_numbers<[1], [0], [0], [1], [0, 0, 1, 1], [], []>} : vector<16x64xbf16>, vector<64x64xbf16>, vector<16x64xf32> -> vector<16x64xf32>
    %101 = arith.addf %97, %100 : vector<16x64xf32>
    %c0_104 = arith.constant 0 : index
    %c0_105 = arith.constant 0 : index
    %c0_106 = arith.constant 0 : index
    %102 = vector.load %arg13[%c0_104, %c0_105, %c0_106] : memref<2x16x64xf32, #tpu.memory_space<vmem>>, vector<1x16x64xf32>
    %103 = vector.shape_cast %102 : vector<1x16x64xf32> to vector<16x64xf32>
    %104 = vector.shape_cast %101 : vector<16x64xf32> to vector<1x16x64xf32>
    tpu.vector_store %arg13[%c0_104, %c0_105, %c0_106], %104 {strides = array<i32>} : memref<2x16x64xf32, #tpu.memory_space<vmem>>, vector<1x16x64xf32>,
    %c1_107 = arith.constant 1 : index
    %c0_108 = arith.constant 0 : index
    %c0_109 = arith.constant 0 : index
    %105 = vector.load %arg11[%c1_107, %c0_108, %c0_109] : memref<2x18x64xbf16, #tpu.memory_space<vmem>>, vector<1x16x64xbf16>
    %106 = vector.shape_cast %105 : vector<1x16x64xbf16> to vector<16x64xbf16>
    %cst_110 = arith.constant dense<0.000000e+00> : vector<16x64xf32>
    %107 = tpu.matmul %106, %86, %cst_110 {dimension_numbers = #tpu.dot_dimension_numbers<[1], [0], [0], [1], [0, 0, 1, 1], [], []>} : vector<16x64xbf16>, vector<64x64xbf16>, vector<16x64xf32> -> vector<16x64xf32>
    %c1_111 = arith.constant 1 : index
    %c1_112 = arith.constant 1 : index
    %c0_113 = arith.constant 0 : index
    %108 = vector.load %arg11[%c1_111, %c1_112, %c0_113] : memref<2x18x64xbf16, #tpu.memory_space<vmem>>, vector<1x16x64xbf16>
    %109 = vector.shape_cast %108 : vector<1x16x64xbf16> to vector<16x64xbf16>
    %cst_114 = arith.constant dense<0.000000e+00> : vector<16x64xf32>
    %110 = tpu.matmul %109, %88, %cst_114 {dimension_numbers = #tpu.dot_dimension_numbers<[1], [0], [0], [1], [0, 0, 1, 1], [], []>} : vector<16x64xbf16>, vector<64x64xbf16>, vector<16x64xf32> -> vector<16x64xf32>
    %111 = arith.addf %107, %110 : vector<16x64xf32>
    %c1_115 = arith.constant 1 : index
    %c2_116 = arith.constant 2 : index
    %c0_117 = arith.constant 0 : index
    %112 = vector.load %arg11[%c1_115, %c2_116, %c0_117] : memref<2x18x64xbf16, #tpu.memory_space<vmem>>, vector<1x16x64xbf16>
    %113 = vector.shape_cast %112 : vector<1x16x64xbf16> to vector<16x64xbf16>
    %cst_118 = arith.constant dense<0.000000e+00> : vector<16x64xf32>
    %114 = tpu.matmul %113, %90, %cst_118 {dimension_numbers = #tpu.dot_dimension_numbers<[1], [0], [0], [1], [0, 0, 1, 1], [], []>} : vector<16x64xbf16>, vector<64x64xbf16>, vector<16x64xf32> -> vector<16x64xf32>
    %115 = arith.addf %111, %114 : vector<16x64xf32>
    %c1_119 = arith.constant 1 : index
    %c0_120 = arith.constant 0 : index
    %c0_121 = arith.constant 0 : index
    %116 = vector.load %arg13[%c1_119, %c0_120, %c0_121] : memref<2x16x64xf32, #tpu.memory_space<vmem>>, vector<1x16x64xf32>
    %117 = vector.shape_cast %116 : vector<1x16x64xf32> to vector<16x64xf32>
    %118 = vector.shape_cast %115 : vector<16x64xf32> to vector<1x16x64xf32>
    tpu.vector_store %arg13[%c1_119, %c0_120, %c0_121], %118 {strides = array<i32>} : memref<2x16x64xf32, #tpu.memory_space<vmem>>, vector<1x16x64xf32>,
    %c0_122 = arith.constant 0 : index
    %c0_123 = arith.constant 0 : index
    %c0_124 = arith.constant 0 : index
    %119 = vector.load %arg13[%c0_122, %c0_123, %c0_124] : memref<2x16x64xf32, #tpu.memory_space<vmem>>, vector<2x16x64xf32>
    %c0_125 = arith.constant 0 : index
    %c0_126 = arith.constant 0 : index
    %120 = vector.load %arg5[%c0_125, %c0_126] : memref<1x4xf32, #tpu.memory_space<vmem>>, vector<1x4xf32>
    %c0_127 = arith.constant 0 : index
    %c0_128 = arith.constant 0 : index
    %121 = vector.load %arg6[%c0_127, %c0_128] : memref<1x4xf32, #tpu.memory_space<vmem>>, vector<1x4xf32>
    %cst_129 = arith.constant dense<0.000000e+00> : vector<16x64xf32>
    %122 = vector.multi_reduction <add>, %119, %cst_129 [0] : vector<2x16x64xf32> to vector<16x64xf32>
    %cst_130 = arith.constant dense<0.000000e+00> : vector<64xf32>
    %123 = vector.multi_reduction <add>, %122, %cst_130 [0] : vector<16x64xf32> to vector<64xf32>
    %124 = vector.shape_cast %123 : vector<64xf32> to vector<1x64xf32>
    %cst_131 = arith.constant dense<0.000000e+00> : vector<1x4xf32>
    %125 = tpu.matmul %124, %0, %cst_131 {dimension_numbers = #tpu.dot_dimension_numbers<[1], [0], [0], [1], [0, 0, 1, 1], [], []>} : vector<1x64xf32>, vector<64x4xf32>, vector<1x4xf32> -> vector<1x4xf32>
    %cst_132 = arith.constant 0.001953125 : f32
    %126 = vector.broadcast %cst_132 : f32 to vector<1x4xf32>
    %127 = arith.mulf %125, %126 : vector<1x4xf32>
    %cst_133 = arith.constant dense<0.000000e+00> : vector<1x64xf32>
    %128 = tpu.matmul %127, %1, %cst_133 {dimension_numbers = #tpu.dot_dimension_numbers<[1], [0], [0], [1], [0, 0, 1, 1], [], []>} : vector<1x4xf32>, vector<4x64xf32>, vector<1x64xf32> -> vector<1x64xf32>
    %129 = vector.shape_cast %128 : vector<1x64xf32> to vector<1x1x64xf32>
    %130 = vector.broadcast %129 : vector<1x1x64xf32> to vector<2x16x64xf32>
    %131 = arith.subf %119, %130 : vector<2x16x64xf32>
    %132 = arith.mulf %131, %131 : vector<2x16x64xf32>
    %cst_134 = arith.constant dense<0.000000e+00> : vector<16x64xf32>
    %133 = vector.multi_reduction <add>, %132, %cst_134 [0] : vector<2x16x64xf32> to vector<16x64xf32>
    %cst_135 = arith.constant dense<0.000000e+00> : vector<64xf32>
    %134 = vector.multi_reduction <add>, %133, %cst_135 [0] : vector<16x64xf32> to vector<64xf32>
    %135 = vector.shape_cast %134 : vector<64xf32> to vector<1x64xf32>
    %cst_136 = arith.constant dense<0.000000e+00> : vector<1x4xf32>
    %136 = tpu.matmul %135, %0, %cst_136 {dimension_numbers = #tpu.dot_dimension_numbers<[1], [0], [0], [1], [0, 0, 1, 1], [], []>} : vector<1x64xf32>, vector<64x4xf32>, vector<1x4xf32> -> vector<1x4xf32>
    %cst_137 = arith.constant 0.001953125 : f32
    %137 = vector.broadcast %cst_137 : f32 to vector<1x4xf32>
    %138 = arith.mulf %136, %137 : vector<1x4xf32>
    %cst_138 = arith.constant 9.99999974E-6 : f32
    %139 = vector.broadcast %cst_138 : f32 to vector<1x4xf32>
    %140 = arith.addf %138, %139 : vector<1x4xf32>
    %141 = math.rsqrt %140 : vector<1x4xf32>
    %142 = arith.mulf %141, %120 : vector<1x4xf32>
    %cst_139 = arith.constant dense<0.000000e+00> : vector<1x64xf32>
    %143 = tpu.matmul %142, %1, %cst_139 {dimension_numbers = #tpu.dot_dimension_numbers<[1], [0], [0], [1], [0, 0, 1, 1], [], []>} : vector<1x4xf32>, vector<4x64xf32>, vector<1x64xf32> -> vector<1x64xf32>
    %144 = arith.mulf %127, %142 : vector<1x4xf32>
    %145 = arith.subf %121, %144 : vector<1x4xf32>
    %cst_140 = arith.constant dense<0.000000e+00> : vector<1x64xf32>
    %146 = tpu.matmul %145, %1, %cst_140 {dimension_numbers = #tpu.dot_dimension_numbers<[1], [0], [0], [1], [0, 0, 1, 1], [], []>} : vector<1x4xf32>, vector<4x64xf32>, vector<1x64xf32> -> vector<1x64xf32>
    %147 = vector.shape_cast %143 : vector<1x64xf32> to vector<1x1x64xf32>
    %148 = vector.broadcast %147 : vector<1x1x64xf32> to vector<2x16x64xf32>
    %149 = arith.mulf %119, %148 : vector<2x16x64xf32>
    %150 = vector.shape_cast %146 : vector<1x64xf32> to vector<1x1x64xf32>
    %151 = vector.broadcast %150 : vector<1x1x64xf32> to vector<2x16x64xf32>
    %152 = arith.addf %149, %151 : vector<2x16x64xf32>
    %c0_141 = arith.constant 0 : index
    %c0_142 = arith.constant 0 : index
    %c0_143 = arith.constant 0 : index
    %153 = vector.load %arg0[%c0_141, %c0_142, %c0_143] : memref<2x16x64xf32, #tpu.memory_space<vmem>>, vector<2x16x64xf32>
    %154 = arith.addf %152, %153 : vector<2x16x64xf32>
    %cst_144 = arith.constant 0.000000e+00 : f32
    %155 = vector.broadcast %cst_144 : f32 to vector<2x16x64xf32>
    %156 = arith.maximumf %154, %155 : vector<2x16x64xf32>
    %c0_145 = arith.constant 0 : index
    %c0_146 = arith.constant 0 : index
    %c0_147 = arith.constant 0 : index
    %157 = vector.load %arg9[%c0_145, %c0_146, %c0_147] : memref<2x16x64xf32, #tpu.memory_space<vmem>>, vector<2x16x64xf32>
    tpu.vector_store %arg9[%c0_145, %c0_146, %c0_147], %156 {strides = array<i32>} : memref<2x16x64xf32, #tpu.memory_space<vmem>>, vector<2x16x64xf32>,
    return
  }
}

</mosaic_0001>

<bundles_post_ra>
// kernel: tpu_custom_call.1
= control target key start
LH: loop header
LB: loop body
LE: loop exit
PB: predicated region body
PF: predicated region fallthrough
CT: control target
= control target key end

     0   :  { %14 = vsyncpa [#allocation7], 0  ;;  %s3182_s0 = inlined_call_operand.vmem [shape: f32[2,16,64], index: 0, kind: input, shape index: {}]   ;;  %s3183_s1 = inlined_call_operand.hbm [shape: bf16[3,64,64], index: 1, kind: input, shape index: {}]   ;;  %s3184_s2 = inlined_call_operand.hbm [shape: bf16[3,64,64], index: 2, kind: input, shape index: {}]   ;;  %s3185_s3 = inlined_call_operand.vmem [shape: f32[1,4], index: 3, kind: input, shape index: {}]   ;;  %s3186_s4 = inlined_call_operand.vmem [shape: f32[1,4], index: 4, kind: input, shape index: {}]   ;;  %s3187_s5 = inlined_call_operand.vmem [shape: f32[1,4], index: 5, kind: input, shape index: {}]   ;;  %s3188_s6 = inlined_call_operand.vmem [shape: f32[1,4], index: 6, kind: input, shape index: {}]   ;;  %s3189_s7 = inlined_call_operand.vmem [shape: f32[64,4], index: 7, kind: input, shape index: {}]   ;;  %s3190_s8 = inlined_call_operand.vmem [shape: f32[4,64], index: 8, kind: input, shape index: {}]   ;;  %s3191_s9 = inlined_call_operand.hbm [shape: f32[2,16,64], index: 9, kind: output, shape index: {}]  }
   0x1   :  { %15 = vsyncpa [#allocation10], 0 }
   0x2   :  { %16 = vsyncpa [#allocation8], 0  ;;  %s2658_s30 = smov [#allocation6]   ;;  %s2586_s13 = scalar_lea.hbm %s3183_s1, 1536 }
   0x3   :  { %s24_s10 = sshll.u32 %s2658_s30, 4  ;;  %p2587_p0 = scmp.ne.s32.totalorder %s3183_s1, %s2586_s13  ;;  %s25_s10 = int_to_ptr.vmem [resolvable:$true] %s24_s10 }
   0x4   :  { %p2590_p1 = scmp.lt.u32.totalorder %s2586_s13, %s3183_s1 }
   0x6   :  { %p2592_p2 = pnand %p2590_p1, %p2587_p0 }
   0x8   :  { %2595 = shalt.err (!%p2592_p2)
}
   0x9   :  { %s2596_s18 = scalar_lea.vmem %s25_s10, 1536  ;;  %p2601_p4 = scmp.lt.s32.totalorder %s25_s10, %s25_s10 }
   0xa   :  { %p2597_p3 = scmp.ne.s32.totalorder %s25_s10, %s2596_s18  ;;  %p2602_p5 = scmp.lt.s32.totalorder %s2596_s18, %s2596_s18 }
   0xc   :  { %p2603_p6 = por %p2602_p5, %p2601_p4 }
   0xe   :  { %p2604_p7 = pnand %p2603_p6, %p2597_p3 }
  0x10   :  { %2607 = shalt.err (!%p2604_p7)
}
  0x11   :  { %s2659_s19 = smov 64   ;;  %s2660_s20 = smov 4  }
  0x12   :  { %30 = dma.hbm_to_vmem [thread:$0]  %s3183_s1, 1536, %s25_s10, [#allocation7], %s2659_s19, %s2659_s19, %s2660_s20  }
  0x13   :  { %s2661_s23 = smov [#allocation9]   ;;  %s2608_s27 = scalar_lea.hbm %s3184_s2, 1536 }
  0x14   :  { %s36_s24 = sshll.u32 %s2661_s23, 4  ;;  %p2609_p8 = scmp.ne.s32.totalorder %s3184_s2, %s2608_s27  ;;  %s37_s24 = int_to_ptr.vmem [resolvable:$true] %s36_s24 }
  0x15   :  { %p2612_p9 = scmp.lt.u32.totalorder %s2608_s27, %s3184_s2 }
  0x17   :  { %p2614_p10 = pnand %p2612_p9, %p2609_p8 }
  0x19   :  { %2617 = shalt.err (!%p2614_p10)
}
  0x1a   :  { %s2618_s12 = scalar_lea.vmem %s37_s24, 1536  ;;  %p2623_p12 = scmp.lt.s32.totalorder %s37_s24, %s37_s24 }
  0x1b   :  { %p2619_p11 = scmp.ne.s32.totalorder %s37_s24, %s2618_s12  ;;  %p2624_p13 = scmp.lt.s32.totalorder %s2618_s12, %s2618_s12 }
  0x1d   :  { %p2625_p0 = por %p2624_p13, %p2623_p12 }
  0x1f   :  { %p2626_p1 = pnand %p2625_p0, %p2619_p11 }
  0x21   :  { %2629 = shalt.err (!%p2626_p1)
}
  0x22   :  { %42 = dma.hbm_to_vmem [thread:$0]  %s3184_s2, 1536, %s37_s24, [#allocation10], %s2659_s19, %s2659_s19, %s2660_s20  }
  0x23   :  { %2652 = dma.done.wait [#allocation7], 1536  }
  0x24   :  { %2653 = vsyncadd [#allocation7], 4294965760 }
  0x25   :  { %2654 = dma.done.wait [#allocation10], 1536  }
  0x26   :  { %2655 = vsyncadd [#allocation10], 4294965760  ;;  %v2662_v0 = vmov 0.0   ;;  %vm2663_vm0 = vmmov 0   ;;  %v2547_v1 = vld [vmem:[#allocation6 + $0x20] sm:$0xff]   ;;  %v2548_v2 = vld [vmem:[#allocation6 + $0x28] sm:$0xff]  }
  0x27   :  { %2207 = vmatprep.subr.bf16.mxu0 %v2662_v0  ;;  %2243 = vmatprep.subr.bf16.mxu1 %v2662_v0  ;;  %v71_v3 = vld [vmem:[%s3182_s0] sm:$0xff]  ;;  %v72_v4 = vld [vmem:[%s3182_s0 + $0x8] sm:$0xff]  ;;  %vm87_vm1 = vsmask.f32 256  ;;  %vm88_vm2 = vsmask.f32 4368 }
  0x28   :  { %2215 = vmatprep.mubr.msk.bf16.mxu0 %vm2663_vm0, %v2662_v0  ;;  %2251 = vmatprep.mubr.msk.bf16.mxu1 %vm2663_vm0, %v2662_v0  ;;  %v2091_v5 = vpack.c.bf16 %v71_v3, %v71_v3  ;;  %v2092_v6 = vpack.c.bf16 %v72_v4, %v72_v4  ;;  %vm130_vm3 = vcmask 519168   ;;  %v2549_v7 = vld [vmem:[#allocation6 + $0x30] sm:$0xff]   ;;  %vm131_vm4 = vsmask.f32 7938  ;;  %v73_v8 = vld [vmem:[%s3182_s0 + $0x10] sm:$0xff]  ;;  %v74_v9 = vld [vmem:[%s3182_s0 + $0x18] sm:$0xff] }
  0x29   :  { %2208 = vmatpush3.bf16.msra.mxu0 %v2547_v1  ;;  %2244 = vmatpush3.bf16.msra.mxu1 %v2547_v1  ;;  %vm138_vm5 = vcmask 516096   ;;  %vm2765_vm6 = vmor %vm87_vm1, %vm88_vm2  ;;  %v2550_v15 = vld [vmem:[#allocation6 + $0x38] sm:$0xff]   ;;  %v133_v16 = vld [vmem:[#allocation2] sm:$0xf]  ;;  %v2093_v17 = vpack.c.bf16 %v73_v8, %v73_v8  ;;  %v2094_v18 = vpack.c.bf16 %v74_v9, %v74_v9  ;;  %vm200_vm10 = vsmask.f32 7424 }
  0x2a   :  { %2209 = vmatprep.subr.bf16.mxu0 %v2662_v0  ;;  %2245 = vmatprep.subr.bf16.mxu1 %v2662_v0  ;;  %v91_v11 = vshrl.u32 %v2091_v5, 16  ;;  %v94_v12 = vshll.u32 %v2091_v5, 16  ;;  %v99_v13 = vshrl.u32 %v2092_v6, 16  ;;  %v102_v14 = vshll.u32 %v2092_v6, 16  ;;  %vm2771_vm7 = vmand %vm130_vm3, %vm131_vm4  ;;  %v140_v22 = vld [vmem:[#allocation2 + $0x8] sm:$0x1] }
  0x2b   :  { %vm2777_vm8 = vmand %vm138_vm5, %vm87_vm1  ;;  %v108_v24 = vshrl.u32 %v2093_v17, 16  ;;  %v111_v25 = vshll.u32 %v2093_v17, 16  ;;  %v116_v26 = vshrl.u32 %v2094_v18, 16  ;;  %v119_v27 = vshll.u32 %v2094_v18, 16  ;;  %v143_v32 = vld [vmem:[#allocation2 + $0xc] sm:$0xf] }
  0x2c   :  { %v93_v19 = vrot.slane %v91_v11, 7  ;;  %v101_v20 = vrot.slane %v99_v13, 7  ;;  %v147_v35 = vld [vmem:[#allocation2 + $0x14] sm:$0x1]  ;;  %vm2794_vm9 = vmand %vm138_vm5, %vm131_vm4  ;;  %vm237_vm11 = vcmask 523264   ;;  %v2557_v17 = vld [vmem:[#allocation6 + $0x10] sm:$0xff]  }
  0x2d   :  { %2210 = vmatpush3.bf16.msra.mxu0 %v2548_v2  ;;  %2246 = vmatpush3.bf16.msra.mxu1 %v2548_v2  ;;  %v110_v33 = vrot.slane %v108_v24, 7  ;;  %v118_v34 = vrot.slane %v116_v26, 7  ;;  %v2553_v9 = vld [vmem:[#allocation6] sm:$0xff]   ;;  %v2558_v18 = vld [vmem:[#allocation6 + $0x18] sm:$0xff]   ;;  %v2561_v24 = vld [vmem:[#allocation6 + $0x50] sm:$0xff]   ;;  %vm353_vm12 = vcmask 1046528  }
  0x2e   :  { %2211 = vmatprep.subr.bf16.mxu0 %v2662_v0  ;;  %2247 = vmatprep.subr.bf16.mxu1 %v2662_v0  ;;  %v96_v28 = vor.u32 %v94_v12, %v93_v19  ;;  %v97_v29 = vrot.slane %v93_v19, 4  ;;  %v104_v30 = vor.u32 %v102_v14, %v101_v20  ;;  %v106_v31 = vrot.slane %v101_v20, 4  ;;  %v2559_v19 = vld [vmem:[#allocation6 + $0x40] sm:$0xff]   ;;  %v2560_v20 = vld [vmem:[#allocation6 + $0x48] sm:$0xff]   ;;  %s2665_s25 = smov [#allocation11]  }
  0x2f   :  { %v113_v39 = vor.u32 %v111_v25, %v110_v33  ;;  %v114_v40 = vrot.slane %v110_v33, 4  ;;  %v121_v41 = vor.u32 %v119_v27, %v118_v34  ;;  %v123_v42 = vrot.slane %v118_v34, 4  ;;  %s2006_s26 = sshll.u32 %s2665_s25, 4  ;;  %s2007_s26 = int_to_ptr.vmem [resolvable:$true] %s2006_s26 }
  0x30   :  { %v105_v36 = vsel %vm2765_vm6, %v97_v29, %v104_v30  ;;  %v134_v37 = vsel %vm2771_vm7, %v96_v28, %v133_v16  ;;  %v141_v38 = vsel %vm2777_vm8, %v106_v31, %v140_v22  ;;  %v2562_v28 = vld [vmem:[#allocation6 + $0x58] sm:$0xff]   ;;  %vm695_vm13 = vcmask 1043456   ;;  %p2635_p3 = scmp.lt.s32.totalorder %s2007_s26, %s2007_s26 }
  0x31   :  { %2212 = vmatpush3.bf16.msra.mxu0 %v2549_v7  ;;  %2248 = vmatpush3.bf16.msra.mxu1 %v2549_v7  ;;  %135 = vst [vmem:[#allocation2] sm:$0xf] %v134_v37  ;;  %137 = vst.msk [vmem:[#allocation2 + $0x4] sm:$0xf] %vm130_vm3, %v105_v36  ;;  %v122_v44 = vsel %vm2765_vm6, %v114_v40, %v121_v41  ;;  %v144_v45 = vsel %vm2771_vm7, %v113_v39, %v143_v32  ;;  %v63_v36 = vld [vmem:[%s3189_s7 + $0x8] sm:$0xff]  ;;  %v64_v37 = vld [vmem:[%s3189_s7 + $0x10] sm:$0xff] }
  0x32   :  { %2213 = vmatprep.subr.bf16.mxu0 %v2662_v0  ;;  %2249 = vmatprep.subr.bf16.mxu1 %v2662_v0  ;;  %142 = vst [vmem:[#allocation2 + $0x8] sm:$0x1] %v141_v38  ;;  %v148_v46 = vsel %vm2777_vm8, %v123_v42, %v147_v35  ;;  %145 = vst [vmem:[#allocation2 + $0xc] sm:$0xf] %v144_v45  ;;  %v62_v35 = vld [vmem:[%s3189_s7] sm:$0xff]  ;;  %v2664_v38 = vmov 0.0|0.0  }
  0x33   :  { %146 = vst.msk [vmem:[#allocation2 + $0x10] sm:$0xf] %vm130_vm3, %v122_v44  ;;  %149 = vst [vmem:[#allocation2 + $0x14] sm:$0x1] %v148_v46  ;;  %v2876_v39 = vpack.c.bf16 %v63_v36, %v62_v35  ;;  %v65_v40 = vld [vmem:[%s3189_s7 + $0x18] sm:$0xff]  ;;  %v66_v42 = vld [vmem:[%s3189_s7 + $0x20] sm:$0xff] }
  0x34   :  { %v2882_v41 = vpack.c.bf16 %v65_v40, %v64_v37  ;;  %v67_v44 = vld [vmem:[%s3189_s7 + $0x28] sm:$0xff]  ;;  %v68_v46 = vld [vmem:[%s3189_s7 + $0x30] sm:$0xff]  ;;  %vm691_vm14 = vcmask 31744  }
  0x35   :  { %2214 = vmatpush3.bf16.msra.mxu0 %v2550_v15  ;;  %2250 = vmatpush3.bf16.msra.mxu1 %v2550_v15  ;;  %v2556_v15 = vld [vmem:[#allocation6 + $0x8] sm:$0xff]   ;;  %v2892_v45 = vpack.c.bf16 %v67_v44, %v66_v42 }
  0x36   :  { %2219 = vmatprep.subr.bf16.mxu0 %v2662_v0  ;;  %2255 = vmatprep.subr.bf16.mxu1 %v2662_v0 }
  0x38   :  { %v150_v47 = vld [vmem:[#allocation2] sm:$0x1]  ;;  %v2813_v55 = vld [vmem:[#allocation2 + $0x4] sm:$0xf]  ;;  %v349_v22 = vld [vmem:[#allocation2] sm:$0xe] }
  0x39   :  { %v157_v48 = vld [vmem:[#allocation2 + $0x8] sm:$0x1]  ;;  %v151_v49 = vsel %vm2777_vm8, 0, %v150_v47  ;;  %v153_v51 = vld [vmem:[#allocation2 + $0xc] sm:$0x1]  ;;  %v2035_v25 = vcombine.low %v349_v22, %v2813_v55  ;;  %v69_v47 = vld [vmem:[%s3189_s7 + $0x38] sm:$0xff] }
  0x3a   :  { %v158_v50 = vsel %vm2794_vm9, 0, %v157_v48  ;;  %152 = vst [vmem:[#allocation2] sm:$0x1] %v151_v49  ;;  %v160_v52 = vld [vmem:[#allocation2 + $0x14] sm:$0x1]  ;;  %v154_v53 = vsel %vm2777_vm8, 0, %v153_v51  ;;  %v2902_v48 = vpack.c.bf16 %v69_v47, %v68_v46 }
  0x3b   :  { %159 = vst [vmem:[#allocation2 + $0x8] sm:$0x1] %v158_v50  ;;  %v161_v54 = vsel %vm2794_vm9, 0, %v160_v52  ;;  %155 = vst [vmem:[#allocation2 + $0xc] sm:$0x1] %v154_v53  ;;  %v354_v29 = vrot.slane %v2035_v25, 1 }
  0x3c   :  { %162 = vst [vmem:[#allocation2 + $0x14] sm:$0x1] %v161_v54  ;;  %v2818_v59 = vld [vmem:[#allocation2 + $0x10] sm:$0xf]  ;;  %v540_v26 = vld [vmem:[#allocation2 + $0xc] sm:$0xe] }
  0x3d   :  { %v2045_v27 = vcombine.low %v540_v26, %v2818_v59  ;;  %v2910_v49 = vld [vmem:[%s3190_s8] sm:$0xf] }
  0x3f   :  { %v544_v31 = vrot.slane %v2045_v27, 1 }
  0x41   :  { %v189_v56 = vld [vmem:[#allocation2] sm:$0xf] }
  0x42   :  { %v2023_v57 = vcombine.low %v189_v56, %v2813_v55  ;;  %v2816_v58 = vld [vmem:[#allocation2 + $0x8] ss:$0 sps:$4 sm:$0x11]   ;;  %v430_v63 = vld [vmem:[#allocation2 + $0xc] sm:$0xf] }
  0x43   :  { %v209_v62 = vshll.u32 %v2816_v58, 16  ;;  %v2041_v1 = vcombine.low %v430_v63, %v2818_v59  ;;  %v2822_v2 = vld [vmem:[#allocation2 + $0x14] ss:$0 sps:$4 sm:$0x11]   ;;  %v355_v30 = vrot.slane %v2816_v58, 1 }
  0x44   :  { %v202_v60 = vshrl.u32 %v2023_v57, 16  ;;  %v204_v61 = vshll.u32 %v2023_v57, 16  ;;  %v449_v7 = vshll.u32 %v2822_v2, 16  ;;  %v545_v32 = vrot.slane %v2822_v2, 1 }
  0x45   :  { %v211_v4 = vrot.slane %v209_v62, 1  ;;  %v442_v5 = vshrl.u32 %v2041_v1, 16  ;;  %v444_v6 = vshll.u32 %v2041_v1, 16  ;;  %v356_v33 = vsel %vm353_vm12, %v354_v29, %v355_v30 }
  0x46   :  { %v206_v3 = vrot.slane %v204_v61, 1  ;;  %v451_v12 = vrot.slane %v449_v7, 1  ;;  %v546_v34 = vsel %vm353_vm12, %v544_v31, %v545_v32 }
  0x47   :  { %v446_v11 = vrot.slane %v444_v6, 1 }
  0x48   :  { %v207_v8 = vor.u32 %v206_v3, %v202_v60 }
  0x49   :  { %v447_v14 = vor.u32 %v446_v11, %v442_v5 }
  0x4a   :  { %v212_v13 = vsel %vm200_vm10, %v207_v8, %v211_v4 }
  0x4b   :  { %2216 = vmatmul.mubr.msk.bf16.vlgmr.msra.gmra.mrb[0].mxu0 %vm237_vm11, %v212_v13  ;;  %v452_v16 = vsel %vm200_vm10, %v447_v14, %v451_v12 }
  0x4c   :  { %2220 = vmatpush3.bf16.msra.mxu0 %v2553_v9  ;;  %2227 = vmatprep.mubr.msk.bf16.mxu0 %vm2663_vm0, %v2662_v0 }
  0x4d   :  { %2221 = vmatprep.subr.bf16.mxu0 %v2662_v0  ;;  %2252 = vmatmul.mubr.msk.bf16.vlgmr.msra.gmra.mrb[0].mxu1 %vm237_vm11, %v452_v16 }
  0x4e   :  { %2256 = vmatpush3.bf16.msra.mxu1 %v2553_v9  ;;  %2263 = vmatprep.mubr.msk.bf16.mxu1 %vm2663_vm0, %v2662_v0 }
  0x4f   :  { %2257 = vmatprep.subr.bf16.mxu1 %v2662_v0 }
  0x50   :  { %2222 = vmatpush3.bf16.msra.mxu0 %v2556_v15 }
  0x51   :  { %2223 = vmatprep.subr.bf16.mxu0 %v2662_v0 }
  0x52   :  { %2258 = vmatpush3.bf16.msra.mxu1 %v2556_v15 }
  0x53   :  { %2259 = vmatprep.subr.bf16.mxu1 %v2662_v0 }
  0x54   :  { %2224 = vmatpush3.bf16.msra.mxu0 %v2557_v17 }
  0x55   :  { %2225 = vmatprep.subr.bf16.mxu0 %v2662_v0 }
  0x56   :  { %2260 = vmatpush3.bf16.msra.mxu1 %v2557_v17 }
  0x57   :  { %2261 = vmatprep.subr.bf16.mxu1 %v2662_v0 }
  0x58   :  { %2226 = vmatpush3.bf16.msra.mxu0 %v2558_v18 }
  0x59   :  { %2231 = vmatprep.subr.bf16.mxu0 %v2662_v0 }
  0x5a   :  { %2262 = vmatpush3.bf16.msra.mxu1 %v2558_v18  ;;  %v769_v18 = vlaneseq }
  0x5b   :  { %2228 = vmatmul.mubr.msk.bf16.vlgmr.msra.gmra.mrb[0].mxu0 %vm237_vm11, %v2023_v57  ;;  %2267 = vmatprep.subr.bf16.mxu1 %v2662_v0 }
  0x5c   :  { %2232 = vmatpush3.bf16.msra.mxu0 %v2559_v19  ;;  %2239 = vmatprep.mubr.msk.bf16.mxu0 %vm2663_vm0, %v2662_v0 }
  0x5d   :  { %2233 = vmatprep.subr.bf16.mxu0 %v2662_v0  ;;  %2264 = vmatmul.mubr.msk.bf16.vlgmr.msra.gmra.mrb[0].mxu1 %vm237_vm11, %v2041_v1 }
  0x5e   :  { %2268 = vmatpush3.bf16.msra.mxu1 %v2559_v19  ;;  %2275 = vmatprep.mubr.msk.bf16.mxu1 %vm2663_vm0, %v2662_v0  ;;  %v770_v19 = vshrl.u32 %v769_v18, 7 }
  0x5f   :  { %2269 = vmatprep.subr.bf16.mxu1 %v2662_v0 }
  0x60   :  { %2234 = vmatpush3.bf16.msra.mxu0 %v2560_v20 }
  0x61   :  { %2235 = vmatprep.subr.bf16.mxu0 %v2662_v0 }
  0x62   :  { %2270 = vmatpush3.bf16.msra.mxu1 %v2560_v20  ;;  %v2954_v20 = vsub.s32 0, %v770_v19 }
  0x63   :  { %2271 = vmatprep.subr.bf16.mxu1 %v2662_v0 }
  0x64   :  { %2236 = vmatpush3.bf16.msra.mxu0 %v2561_v24 }
  0x65   :  { %2237 = vmatprep.subr.bf16.mxu0 %v2662_v0 }
  0x66   :  { %2272 = vmatpush3.bf16.msra.mxu1 %v2561_v24 }
  0x67   :  { %2273 = vmatprep.subr.bf16.mxu1 %v2662_v0 }
  0x68   :  { %2238 = vmatpush3.bf16.msra.mxu0 %v2562_v28 }
  0x69   :  { %2457 = vmatprep.subr.bf16.mxu0 %v2664_v38 }
  0x6a   :  { %2274 = vmatpush3.bf16.msra.mxu1 %v2562_v28 }
  0x6b   :  { %2240 = vmatmul.mubr.msk.bf16.vlgmr.msra.gmra.mrb[0].mxu0 %vm237_vm11, %v356_v33  ;;  %2298 = vmatprep.subr.mxu1 %v2662_v0 }
  0x6c   :  { %2295 = vmatprep.mubr.msk.f32.mxu0 %vm2663_vm0, %v2662_v0  ;;  %2459 = vmatpush3.bf16.msra.mxu0 %v2876_v39 }
  0x6d   :  { %2276 = vmatmul.mubr.msk.bf16.vlgmr.msra.gmra.mrb[0].mxu1 %vm237_vm11, %v546_v34  ;;  %2460 = vmatprep.subr.bf16.mxu0 %v2664_v38 }
  0x6e   :  { %2300 = vmatprep.mubr.msk.f32.mxu1 %vm2663_vm0, %v2662_v0  ;;  %2299 = vmatpush3.msk.msra.mxu1 %vm695_vm13, %v2910_v49 }
  0x6f   :  { %2469 = vmatprep.subr.bf16.mxu1 %v2664_v38 }
  0x70   :  { %2462 = vmatpush3.bf16.msra.mxu0 %v2882_v41 }
  0x71   :  { %2463 = vmatprep.subr.bf16.mxu0 %v2664_v38 }
  0x74   :  { %2465 = vmatpush3.bf16.msra.mxu0 %v2892_v45 }
  0x75   :  { %2466 = vmatprep.subr.bf16.mxu0 %v2664_v38 }
  0x78   :  { %2468 = vmatpush3.bf16.msra.mxu0 %v2902_v48 }
  0x79   :  { %2322 = vmatprep.subr.mxu0 %v2662_v0 }
 0x13e   :  { %v418_v50 = vpop.f32.mrb[0].mxu0 }
 0x13f   :  { %427 = vst.msk [vmem:[#allocation4] sm:$0xff] %vm237_vm11, %v418_v50  ;;  %v2241_v51 = vpop.f32.mrb[1].mxu0 }
 0x140   :  { %v421_v52 = vpop.f32.mrb[2].mxu0  ;;  %v584_v53 = vpop.f32.mrb[0].mxu1 }
 0x141   :  { %428 = vst.msk [vmem:[#allocation4 + $0x8] sm:$0xff] %vm237_vm11, %v421_v52  ;;  %v2242_v54 = vpop.f32.mrb[3].mxu0  ;;  %594 = vst.msk [vmem:[#allocation4 + $0x10] sm:$0xff] %vm237_vm11, %v584_v53  ;;  %v2277_v55 = vpop.f32.mrb[1].mxu1 }
 0x142   :  { %v587_v56 = vpop.f32.mrb[2].mxu1 }
 0x143   :  { %595 = vst.msk [vmem:[#allocation4 + $0x18] sm:$0xff] %vm237_vm11, %v587_v56  ;;  %v2278_v57 = vpop.f32.mrb[3].mxu1 }
 0x146   :  { %v2919_v58 = vld [vmem:[#allocation4] sm:$0xff] }
 0x147   :  { %v602_v60 = vsel %vm237_vm11, %v2919_v58, 0.0 }
 0x148   :  { %v2921_v59 = vld [vmem:[#allocation4 + $0x8] sm:$0xff]  ;;  %v2925_v61 = vld [vmem:[#allocation4 + $0x10] sm:$0xff] }
 0x149   :  { %v603_v62 = vsel %vm237_vm11, %v2925_v61, 0.0  ;;  %v605_v63 = vsel %vm237_vm11, %v2921_v59, 0.0 }
 0x14a   :  { %v2931_v1 = vld [vmem:[#allocation4 + $0x18] sm:$0xff]  ;;  %v604_v2 = vadd.f32 %v603_v62, %v602_v60 }
 0x14b   :  { %v606_v3 = vsel %vm237_vm11, %v2931_v1, 0.0 }
 0x14c   :  { %v607_v4 = vadd.f32 %v606_v3, %v605_v63  ;;  %v608_v5 = vsel %vm237_vm11, %v604_v2, 0.0  ;;  %v600_v63 = vld [vmem:[%s3185_s3] sm:$0x1] }
 0x14e   :  { %v609_v6 = vsel %vm237_vm11, %v607_v4, 0.0  ;;  %v601_v4 = vld [vmem:[%s3186_s4] sm:$0x1] }
 0x14f   :  { %v610_v7 = vadd.f32 %v609_v6, %v608_v5 }
 0x151   :  { %v611_v8 = vrot.slane %v610_v7, 4 }
 0x153   :  { %v612_v9 = vadd.f32 %v611_v8, %v610_v7  ;;  %v2564_v7 = vld [vmem:[#allocation9 + $0x20] sm:$0xff]   ;;  %v2565_v8 = vld [vmem:[#allocation9 + $0x28] sm:$0xff]  }
 0x155   :  { %v613_v11 = vrot.slane %v612_v9, 2 }
 0x157   :  { %v614_v12 = vadd.f32 %v613_v11, %v612_v9  ;;  %v2566_v9 = vld [vmem:[#allocation9 + $0x30] sm:$0xff]   ;;  %v2567_v11 = vld [vmem:[#allocation9 + $0x38] sm:$0xff]  }
 0x159   :  { %v615_v13 = vrot.slane %v614_v12, 1 }
 0x15b   :  { %v616_v14 = vadd.f32 %v615_v13, %v614_v12 }
 0x15d   :  { %2296 = vmatmul.mubr.msk.f32.vlgmr.msra.gmra.mrb[4].mxu0 %vm237_vm11, %v616_v14 }
 0x15e   :  { %2323 = vmatpush3.msk.msra.mxu0 %vm695_vm13, %v2910_v49  ;;  %2324 = vmatprep.mubr.msk.f32.mxu0 %vm2663_vm0, %v2662_v0 }
 0x15f   :  { %2327 = vmatprep.subr.mxu0 %v2662_v0 }
 0x230   :  { %v686_v15 = vpop.f32.mrb[4].mxu0 }
 0x231   :  { %v690_v16 = vmul.f32 0.001953125, %v686_v15  ;;  %v2297_v17 = vpop.f32.mrb[5].mxu0 }
 0x233   :  { %2301 = vmatmul.mubr.msk.f32.vlgmr.msra.gmra.mrb[4].mxu1 %vm691_vm14, %v690_v16 }
 0x234   :  { %2471 = vmatpush3.bf16.msra.mxu1 %v2876_v39  ;;  %2319 = vmatprep.mubr.msk.f32.mxu1 %vm2663_vm0, %v2662_v0 }
 0x235   :  { %2472 = vmatprep.subr.bf16.mxu1 %v2664_v38 }
 0x238   :  { %2474 = vmatpush3.bf16.msra.mxu1 %v2882_v41 }
 0x239   :  { %2475 = vmatprep.subr.bf16.mxu1 %v2664_v38 }
 0x23c   :  { %2477 = vmatpush3.bf16.msra.mxu1 %v2892_v45 }
 0x23d   :  { %2478 = vmatprep.subr.bf16.mxu1 %v2664_v38 }
 0x240   :  { %2480 = vmatpush3.bf16.msra.mxu1 %v2902_v48 }
 0x241   :  { %2368 = vmatprep.subr.bf16.mxu1 %v2662_v0 }
 0x306   :  { %v765_v22 = vpop.f32.mrb[4].mxu1 }
 0x307   :  { %v772_v24 = vrot.slane %v765_v22, %v2954_v20  ;;  %v2302_v25 = vpop.f32.mrb[5].mxu1 }
 0x309   :  { %v773_v26 = vsub.f32 %v2919_v58, %v772_v24  ;;  %v774_v27 = vsub.f32 %v2921_v59, %v772_v24  ;;  %v775_v28 = vsub.f32 %v2925_v61, %v772_v24  ;;  %v776_v29 = vsub.f32 %v2931_v1, %v772_v24 }
 0x30b   :  { %v777_v30 = vmul.f32 %v773_v26, %v773_v26  ;;  %v778_v31 = vmul.f32 %v774_v27, %v774_v27  ;;  %v779_v32 = vmul.f32 %v775_v28, %v775_v28  ;;  %v780_v33 = vmul.f32 %v776_v29, %v776_v29 }
 0x30d   :  { %v781_v34 = vsel %vm237_vm11, %v777_v30, 0.0  ;;  %v782_v35 = vsel %vm237_vm11, %v779_v32, 0.0  ;;  %v784_v36 = vsel %vm237_vm11, %v778_v31, 0.0  ;;  %v785_v37 = vsel %vm237_vm11, %v780_v33, 0.0 }
 0x30e   :  { %v783_v40 = vadd.f32 %v782_v35, %v781_v34  ;;  %v786_v42 = vadd.f32 %v785_v37, %v784_v36 }
 0x310   :  { %v787_v44 = vsel %vm237_vm11, %v783_v40, 0.0  ;;  %v788_v46 = vsel %vm237_vm11, %v786_v42, 0.0 }
 0x311   :  { %v789_v47 = vadd.f32 %v788_v46, %v787_v44  ;;  %v1093_v46 = vld [vmem:[#allocation3] sm:$0xf] }
 0x313   :  { %v790_v50 = vrot.slane %v789_v47, 4 }
 0x315   :  { %v791_v51 = vadd.f32 %v790_v50, %v789_v47 }
 0x317   :  { %v792_v52 = vrot.slane %v791_v51, 2 }
 0x319   :  { %v793_v53 = vadd.f32 %v792_v52, %v791_v51 }
 0x31b   :  { %v794_v54 = vrot.slane %v793_v53, 1 }
 0x31d   :  { %v795_v55 = vadd.f32 %v794_v54, %v793_v53  ;;  %v1097_v53 = vld [vmem:[#allocation3 + $0x8] sm:$0x1] }
 0x31f   :  { %2320 = vmatmul.mubr.msk.f32.vlgmr.msra.gmra.mrb[6].mxu1 %vm237_vm11, %v795_v55 }
 0x320   :  { %2376 = vmatprep.mubr.msk.bf16.mxu1 %vm2663_vm0, %v2662_v0  ;;  %2369 = vmatpush3.bf16.msra.mxu1 %v2564_v7 }
 0x321   :  { %2370 = vmatprep.subr.bf16.mxu1 %v2662_v0 }
 0x324   :  { %2371 = vmatpush3.bf16.msra.mxu1 %v2565_v8 }
 0x325   :  { %2372 = vmatprep.subr.bf16.mxu1 %v2662_v0 }
 0x328   :  { %2373 = vmatpush3.bf16.msra.mxu1 %v2566_v9 }
 0x329   :  { %2374 = vmatprep.subr.bf16.mxu1 %v2662_v0 }
 0x32c   :  { %2375 = vmatpush3.bf16.msra.mxu1 %v2567_v11 }
 0x32d   :  { %2380 = vmatprep.subr.bf16.mxu1 %v2662_v0 }
 0x3f2   :  { %v865_v56 = vpop.f32.mrb[6].mxu1 }
 0x3f3   :  { %v869_v57 = vmul.f32 0.001953125, %v865_v56  ;;  %v2321_v60 = vpop.f32.mrb[7].mxu1 }
 0x3f4   :  { %v1100_v60 = vld [vmem:[#allocation3 + $0xc] sm:$0xf] }
 0x3f5   :  { %v870_v62 = vadd.f32 1e-05, %v869_v57 }
 0x3f7   :  { %2582 = vrsqrt.f32 %v870_v62  ;;  %v1104_v62 = vld [vmem:[#allocation3 + $0x14] sm:$0x1] }
 0x401   :  { %v2583_v2 = vpop.eup %2582 }
 0x402   :  { %v872_v3 = vmul.f32 %v2583_v2, %v600_v63 }
 0x404   :  { %2325 = vmatmul.mubr.msk.f32.vlgmr.msra.gmra.mrb[6].mxu0 %vm691_vm14, %v872_v3  ;;  %v946_v5 = vmul.f32 %v872_v3, %v690_v16 }
 0x405   :  { %2328 = vmatpush3.msk.msra.mxu0 %vm695_vm13, %v2910_v49  ;;  %2329 = vmatprep.mubr.msk.f32.mxu0 %vm2663_vm0, %v2662_v0 }
 0x406   :  { %v947_v6 = vsub.f32 %v601_v4, %v946_v5  ;;  %2332 = vmatprep.subr.bf16.mxu0 %v2662_v0 }
 0x408   :  { %2330 = vmatmul.mubr.msk.f32.vlgmr.msra.gmra.mrb[8].mxu0 %vm691_vm14, %v947_v6 }
 0x409   :  { %2340 = vmatprep.mubr.msk.bf16.mxu0 %vm2663_vm0, %v2662_v0  ;;  %2333 = vmatpush3.bf16.msra.mxu0 %v2564_v7 }
 0x40a   :  { %2334 = vmatprep.subr.bf16.mxu0 %v2662_v0 }
 0x40d   :  { %2335 = vmatpush3.bf16.msra.mxu0 %v2565_v8 }
 0x40e   :  { %2336 = vmatprep.subr.bf16.mxu0 %v2662_v0 }
 0x411   :  { %2337 = vmatpush3.bf16.msra.mxu0 %v2566_v9 }
 0x412   :  { %2338 = vmatprep.subr.bf16.mxu0 %v2662_v0 }
 0x415   :  { %2339 = vmatpush3.bf16.msra.mxu0 %v2567_v11 }
 0x416   :  { %2344 = vmatprep.subr.bf16.mxu0 %v2662_v0 }
 0x4d7   :  { %v942_v12 = vpop.f32.mrb[6].mxu0 }
 0x4d8   :  { %v1024_v13 = vrot.slane %v942_v12, %v2954_v20  ;;  %v2326_v14 = vpop.f32.mrb[7].mxu0 }
 0x4da   :  { %v1025_v15 = vmul.f32 %v1024_v13, %v2919_v58  ;;  %v1026_v17 = vmul.f32 %v1024_v13, %v2921_v59  ;;  %v1027_v18 = vmul.f32 %v1024_v13, %v2925_v61  ;;  %v1028_v19 = vmul.f32 %v1024_v13, %v2931_v1 }
 0x4db   :  { %v1017_v16 = vpop.f32.mrb[8].mxu0 }
 0x4dc   :  { %v1032_v22 = vrot.slane %v1017_v16, %v2954_v20  ;;  %v2331_v24 = vpop.f32.mrb[9].mxu0 }
 0x4de   :  { %v1033_v25 = vadd.f32 %v1032_v22, %v1025_v15  ;;  %v1034_v26 = vadd.f32 %v1032_v22, %v1026_v17  ;;  %v1035_v27 = vadd.f32 %v1032_v22, %v1027_v18  ;;  %v1036_v28 = vadd.f32 %v1032_v22, %v1028_v19 }
 0x4e0   :  { %v1037_v29 = vmax.f32 %v1033_v25, 0.0  ;;  %v1038_v30 = vmax.f32 %v1034_v26, 0.0  ;;  %v1039_v31 = vmax.f32 %v1035_v27, 0.0  ;;  %v1040_v32 = vmax.f32 %v1036_v28, 0.0 }
 0x4e2   :  { %v2095_v33 = vpack.c.bf16 %v1037_v29, %v1037_v29  ;;  %v2096_v58 = vpack.c.bf16 %v1038_v30, %v1038_v30  ;;  %v2097_v34 = vpack.c.bf16 %v1039_v31, %v1039_v31  ;;  %v2098_v35 = vpack.c.bf16 %v1040_v32, %v1040_v32 }
 0x4e4   :  { %v1054_v59 = vshrl.u32 %v2095_v33, 16  ;;  %v1062_v36 = vshrl.u32 %v2096_v58, 16  ;;  %v1071_v61 = vshrl.u32 %v2097_v34, 16  ;;  %v1079_v37 = vshrl.u32 %v2098_v35, 16 }
 0x4e5   :  { %v1057_v40 = vshll.u32 %v2095_v33, 16  ;;  %v1065_v44 = vshll.u32 %v2096_v58, 16  ;;  %v1074_v50 = vshll.u32 %v2097_v34, 16  ;;  %v1082_v52 = vshll.u32 %v2098_v35, 16 }
 0x4e6   :  { %v1056_v1 = vrot.slane %v1054_v59, 7  ;;  %v1064_v42 = vrot.slane %v1062_v36, 7  ;;  %v1073_v47 = vrot.slane %v1071_v61, 7  ;;  %v1081_v51 = vrot.slane %v1079_v37, 7  ;;  %v2570_v59 = vld [vmem:[#allocation9] sm:$0xff]  }
 0x4e8   :  { %v1059_v54 = vor.u32 %v1057_v40, %v1056_v1  ;;  %v1060_v55 = vrot.slane %v1056_v1, 4  ;;  %v1067_v56 = vor.u32 %v1065_v44, %v1064_v42  ;;  %v1069_v57 = vrot.slane %v1064_v42, 4  ;;  %v2573_v40 = vld [vmem:[#allocation9 + $0x8] sm:$0xff]   ;;  %v2574_v42 = vld [vmem:[#allocation9 + $0x10] sm:$0xff]   ;;  %v2575_v44 = vld [vmem:[#allocation9 + $0x18] sm:$0xff]  }
 0x4e9   :  { %v1076_v63 = vor.u32 %v1074_v50, %v1073_v47  ;;  %v1077_v2 = vrot.slane %v1073_v47, 4  ;;  %v1084_v3 = vor.u32 %v1082_v52, %v1081_v51  ;;  %v1086_v4 = vrot.slane %v1081_v51, 4  ;;  %v2577_v47 = vld [vmem:[#allocation9 + $0x48] sm:$0xff]   ;;  %v2578_v50 = vld [vmem:[#allocation9 + $0x50] sm:$0xff]  }
 0x4ea   :  { %v1068_v5 = vsel %vm2765_vm6, %v1060_v55, %v1067_v56  ;;  %v1094_v6 = vsel %vm2771_vm7, %v1059_v54, %v1093_v46  ;;  %v1098_v7 = vsel %vm2777_vm8, %v1069_v57, %v1097_v53  ;;  %v2576_v46 = vld [vmem:[#allocation9 + $0x40] sm:$0xff]   ;;  %v2579_v53 = vld [vmem:[#allocation9 + $0x58] sm:$0xff]  }
 0x4eb   :  { %v1085_v8 = vsel %vm2765_vm6, %v1077_v2, %v1084_v3  ;;  %1095 = vst [vmem:[#allocation3] sm:$0xf] %v1094_v6  ;;  %1096 = vst.msk [vmem:[#allocation3 + $0x4] sm:$0xf] %vm130_vm3, %v1068_v5  ;;  %v1101_v9 = vsel %vm2771_vm7, %v1076_v63, %v1100_v60  ;;  %v1105_v11 = vsel %vm2777_vm8, %v1086_v4, %v1104_v62 }
 0x4ec   :  { %1099 = vst [vmem:[#allocation3 + $0x8] sm:$0x1] %v1098_v7  ;;  %1102 = vst [vmem:[#allocation3 + $0xc] sm:$0xf] %v1101_v9 }
 0x4ed   :  { %1103 = vst.msk [vmem:[#allocation3 + $0x10] sm:$0xf] %vm130_vm3, %v1085_v8  ;;  %1106 = vst [vmem:[#allocation3 + $0x14] sm:$0x1] %v1105_v11 }
 0x4f2   :  { %v1107_v12 = vld [vmem:[#allocation3] sm:$0x1]  ;;  %v3021_v18 = vld [vmem:[#allocation3 + $0x4] sm:$0xf]  ;;  %v1303_v51 = vld [vmem:[#allocation3] sm:$0xe] }
 0x4f3   :  { %v1113_v13 = vld [vmem:[#allocation3 + $0x8] sm:$0x1]  ;;  %v1108_v10 = vsel %vm2777_vm8, 0, %v1107_v12  ;;  %v1110_v14 = vld [vmem:[#allocation3 + $0xc] sm:$0x1]  ;;  %v2071_v54 = vcombine.low %v1303_v51, %v3021_v18 }
 0x4f4   :  { %v1114_v15 = vsel %vm2794_vm9, 0, %v1113_v13  ;;  %v1116_v16 = vld [vmem:[#allocation3 + $0x14] sm:$0x1]  ;;  %1109 = vst [vmem:[#allocation3] sm:$0x1] %v1108_v10  ;;  %v1111_v21 = vsel %vm2777_vm8, 0, %v1110_v14 }
 0x4f5   :  { %1115 = vst [vmem:[#allocation3 + $0x8] sm:$0x1] %v1114_v15  ;;  %v1117_v17 = vsel %vm2794_vm9, 0, %v1116_v16  ;;  %1112 = vst [vmem:[#allocation3 + $0xc] sm:$0x1] %v1111_v21  ;;  %v1307_v60 = vrot.slane %v2071_v54, 1 }
 0x4f6   :  { %1118 = vst [vmem:[#allocation3 + $0x14] sm:$0x1] %v1117_v17  ;;  %v3023_v22 = vld [vmem:[#allocation3 + $0x10] sm:$0xf]  ;;  %v1493_v52 = vld [vmem:[#allocation3 + $0xc] sm:$0xe] }
 0x4f7   :  { %v2081_v55 = vcombine.low %v1493_v52, %v3023_v22 }
 0x4f9   :  { %v1497_v62 = vrot.slane %v2081_v55, 1 }
 0x4fb   :  { %v1145_v19 = vld [vmem:[#allocation3] sm:$0xf] }
 0x4fc   :  { %v2059_v24 = vcombine.low %v1145_v19, %v3021_v18  ;;  %v3026_v25 = vld [vmem:[#allocation3 + $0x8] ss:$0 sps:$4 sm:$0x11]   ;;  %v1383_v26 = vld [vmem:[#allocation3 + $0xc] sm:$0xf] }
 0x4fd   :  { %v2077_v27 = vcombine.low %v1383_v26, %v3023_v22  ;;  %v3029_v23 = vld [vmem:[#allocation3 + $0x14] ss:$0 sps:$4 sm:$0x11]   ;;  %v1164_v43 = vshll.u32 %v3026_v25, 16  ;;  %v1308_v56 = vrot.slane %v3026_v25, 1 }
 0x4fe   :  { %v1159_v28 = vshll.u32 %v2059_v24, 16  ;;  %v1402_v30 = vshll.u32 %v3029_v23, 16  ;;  %v1157_v31 = vshrl.u32 %v2059_v24, 16  ;;  %v1498_v57 = vrot.slane %v3029_v23, 1 }
 0x4ff   :  { %v1397_v29 = vshll.u32 %v2077_v27, 16  ;;  %v1395_v33 = vshrl.u32 %v2077_v27, 16  ;;  %v1166_v35 = vrot.slane %v1164_v43, 1  ;;  %v1309_v63 = vsel %vm353_vm12, %v1307_v60, %v1308_v56 }
 0x500   :  { %v1161_v32 = vrot.slane %v1159_v28, 1  ;;  %v1404_v61 = vrot.slane %v1402_v30, 1  ;;  %v1499_v2 = vsel %vm353_vm12, %v1497_v62, %v1498_v57 }
 0x501   :  { %v1399_v58 = vrot.slane %v1397_v29, 1 }
 0x502   :  { %v1162_v34 = vor.u32 %v1161_v32, %v1157_v31 }
 0x503   :  { %v1400_v36 = vor.u32 %v1399_v58, %v1395_v33 }
 0x504   :  { %v1167_v37 = vsel %vm200_vm10, %v1162_v34, %v1166_v35 }
 0x505   :  { %2341 = vmatmul.mubr.msk.bf16.vlgmr.msra.gmra.mrb[12].mxu0 %vm237_vm11, %v1167_v37  ;;  %v1405_v1 = vsel %vm200_vm10, %v1400_v36, %v1404_v61 }
 0x506   :  { %2345 = vmatpush3.bf16.msra.mxu0 %v2570_v59  ;;  %2377 = vmatmul.mubr.msk.bf16.vlgmr.msra.gmra.mrb[8].mxu1 %vm237_vm11, %v1405_v1 }
 0x507   :  { %2381 = vmatpush3.bf16.msra.mxu1 %v2570_v59  ;;  %2346 = vmatprep.subr.bf16.mxu0 %v2662_v0 }
 0x508   :  { %2382 = vmatprep.subr.bf16.mxu1 %v2662_v0  ;;  %2352 = vmatprep.mubr.msk.bf16.mxu0 %vm2663_vm0, %v2662_v0 }
 0x509   :  { %2388 = vmatprep.mubr.msk.bf16.mxu1 %vm2663_vm0, %v2662_v0 }
 0x50a   :  { %2347 = vmatpush3.bf16.msra.mxu0 %v2573_v40 }
 0x50b   :  { %2383 = vmatpush3.bf16.msra.mxu1 %v2573_v40  ;;  %2348 = vmatprep.subr.bf16.mxu0 %v2662_v0 }
 0x50c   :  { %2384 = vmatprep.subr.bf16.mxu1 %v2662_v0 }
 0x50e   :  { %2349 = vmatpush3.bf16.msra.mxu0 %v2574_v42 }
 0x50f   :  { %2385 = vmatpush3.bf16.msra.mxu1 %v2574_v42  ;;  %2350 = vmatprep.subr.bf16.mxu0 %v2662_v0 }
 0x510   :  { %2386 = vmatprep.subr.bf16.mxu1 %v2662_v0 }
 0x512   :  { %2351 = vmatpush3.bf16.msra.mxu0 %v2575_v44 }
 0x513   :  { %2387 = vmatpush3.bf16.msra.mxu1 %v2575_v44  ;;  %2356 = vmatprep.subr.bf16.mxu0 %v2662_v0 }
 0x514   :  { %2392 = vmatprep.subr.bf16.mxu1 %v2662_v0 }
 0x515   :  { %2353 = vmatmul.mubr.msk.bf16.vlgmr.msra.gmra.mrb[12].mxu0 %vm237_vm11, %v2059_v24 }
 0x516   :  { %2389 = vmatmul.mubr.msk.bf16.vlgmr.msra.gmra.mrb[8].mxu1 %vm237_vm11, %v2077_v27  ;;  %2357 = vmatpush3.bf16.msra.mxu0 %v2576_v46 }
 0x517   :  { %2393 = vmatpush3.bf16.msra.mxu1 %v2576_v46  ;;  %2358 = vmatprep.subr.bf16.mxu0 %v2662_v0 }
 0x518   :  { %2394 = vmatprep.subr.bf16.mxu1 %v2662_v0  ;;  %2364 = vmatprep.mubr.msk.bf16.mxu0 %vm2663_vm0, %v2662_v0 }
 0x519   :  { %2400 = vmatprep.mubr.msk.bf16.mxu1 %vm2663_vm0, %v2662_v0 }
 0x51a   :  { %2359 = vmatpush3.bf16.msra.mxu0 %v2577_v47 }
 0x51b   :  { %2395 = vmatpush3.bf16.msra.mxu1 %v2577_v47  ;;  %2360 = vmatprep.subr.bf16.mxu0 %v2662_v0 }
 0x51c   :  { %2396 = vmatprep.subr.bf16.mxu1 %v2662_v0 }
 0x51e   :  { %2361 = vmatpush3.bf16.msra.mxu0 %v2578_v50 }
 0x51f   :  { %2397 = vmatpush3.bf16.msra.mxu1 %v2578_v50  ;;  %2362 = vmatprep.subr.bf16.mxu0 %v2662_v0 }
 0x520   :  { %2398 = vmatprep.subr.bf16.mxu1 %v2662_v0 }
 0x522   :  { %2363 = vmatpush3.bf16.msra.mxu0 %v2579_v53 }
 0x523   :  { %2399 = vmatpush3.bf16.msra.mxu1 %v2579_v53  ;;  %2481 = vmatprep.subr.bf16.mxu0 %v2664_v38 }
 0x524   :  { %2423 = vmatprep.subr.mxu1 %v2662_v0 }
 0x525   :  { %2365 = vmatmul.mubr.msk.bf16.vlgmr.msra.gmra.mrb[12].mxu0 %vm237_vm11, %v1309_v63 }
 0x526   :  { %2401 = vmatmul.mubr.msk.bf16.vlgmr.msra.gmra.mrb[8].mxu1 %vm237_vm11, %v1499_v2  ;;  %2483 = vmatpush3.bf16.msra.mxu0 %v2876_v39  ;;  %v1553_v2 = vld [vmem:[%s3187_s5] sm:$0x1] }
 0x527   :  { %2484 = vmatprep.subr.bf16.mxu0 %v2664_v38  ;;  %2420 = vmatprep.mubr.msk.f32.mxu0 %vm2663_vm0, %v2662_v0 }
 0x528   :  { %2424 = vmatpush3.msk.msra.mxu1 %vm695_vm13, %v2910_v49  ;;  %2425 = vmatprep.mubr.msk.f32.mxu1 %vm2663_vm0, %v2662_v0 }
 0x529   :  { %2493 = vmatprep.subr.bf16.mxu1 %v2664_v38 }
 0x52a   :  { %2486 = vmatpush3.bf16.msra.mxu0 %v2882_v41 }
 0x52b   :  { %2487 = vmatprep.subr.bf16.mxu0 %v2664_v38 }
 0x52e   :  { %2489 = vmatpush3.bf16.msra.mxu0 %v2892_v45 }
 0x52f   :  { %2490 = vmatprep.subr.bf16.mxu0 %v2664_v38 }
 0x532   :  { %2492 = vmatpush3.bf16.msra.mxu0 %v2902_v48 }
 0x533   :  { %2447 = vmatprep.subr.mxu0 %v2662_v0 }
 0x5f8   :  { %v1371_v3 = vpop.f32.mrb[12].mxu0 }
 0x5f9   :  { %1380 = vst.msk [vmem:[#allocation5] sm:$0xff] %vm237_vm11, %v1371_v3  ;;  %v1537_v4 = vpop.f32.mrb[8].mxu1  ;;  %v2366_v5 = vpop.f32.mrb[13].mxu0 }
 0x5fa   :  { %1547 = vst.msk [vmem:[#allocation5 + $0x10] sm:$0xff] %vm237_vm11, %v1537_v4  ;;  %v2402_v6 = vpop.f32.mrb[9].mxu1  ;;  %v1374_v7 = vpop.f32.mrb[14].mxu0  ;;  %v1554_v5 = vld [vmem:[%s3188_s6] sm:$0x1] }
 0x5fb   :  { %1381 = vst.msk [vmem:[#allocation5 + $0x8] sm:$0xff] %vm237_vm11, %v1374_v7  ;;  %v1540_v8 = vpop.f32.mrb[10].mxu1  ;;  %v2367_v9 = vpop.f32.mrb[15].mxu0 }
 0x5fc   :  { %1548 = vst.msk [vmem:[#allocation5 + $0x18] sm:$0xff] %vm237_vm11, %v1540_v8  ;;  %v2403_v11 = vpop.f32.mrb[11].mxu1 }
 0x600   :  { %v3090_v12 = vld [vmem:[#allocation5] sm:$0xff] }
 0x601   :  { %v3092_v13 = vld [vmem:[#allocation5 + $0x10] sm:$0xff]  ;;  %v1555_v10 = vsel %vm237_vm11, %v3090_v12, 0.0 }
 0x602   :  { %v3096_v14 = vld [vmem:[#allocation5 + $0x8] sm:$0xff]  ;;  %v1556_v15 = vsel %vm237_vm11, %v3092_v13, 0.0 }
 0x603   :  { %v3100_v16 = vld [vmem:[#allocation5 + $0x18] sm:$0xff]  ;;  %v1557_v21 = vadd.f32 %v1556_v15, %v1555_v10  ;;  %v1558_v17 = vsel %vm237_vm11, %v3096_v14, 0.0 }
 0x604   :  { %v1559_v18 = vsel %vm237_vm11, %v3100_v16, 0.0 }
 0x605   :  { %v1560_v19 = vadd.f32 %v1559_v18, %v1558_v17  ;;  %v1561_v22 = vsel %vm237_vm11, %v1557_v21, 0.0 }
 0x607   :  { %v1562_v24 = vsel %vm237_vm11, %v1560_v19, 0.0 }
 0x608   :  { %v1563_v25 = vadd.f32 %v1562_v24, %v1561_v22  ;;  %v1986_v22 = vld [vmem:[%s3182_s0 + $0x8] sm:$0xff] }
 0x60a   :  { %v1564_v26 = vrot.slane %v1563_v25, 4 }
 0x60c   :  { %v1565_v27 = vadd.f32 %v1564_v26, %v1563_v25 }
 0x60e   :  { %v1566_v23 = vrot.slane %v1565_v27, 2 }
 0x610   :  { %v1567_v28 = vadd.f32 %v1566_v23, %v1565_v27 }
 0x612   :  { %v1568_v43 = vrot.slane %v1567_v28, 1 }
 0x614   :  { %v1569_v29 = vadd.f32 %v1568_v43, %v1567_v28 }
 0x616   :  { %2421 = vmatmul.mubr.msk.f32.vlgmr.msra.gmra.mrb[10].mxu0 %vm237_vm11, %v1569_v29 }
 0x617   :  { %2448 = vmatpush3.msk.msra.mxu0 %vm695_vm13, %v2910_v49  ;;  %2449 = vmatprep.mubr.msk.f32.mxu0 %vm2663_vm0, %v2662_v0 }
 0x618   :  { %2452 = vmatprep.subr.mxu0 %v2662_v0 }
 0x6e9   :  { %v1639_v30 = vpop.f32.mrb[10].mxu0 }
 0x6ea   :  { %v1643_v31 = vmul.f32 0.001953125, %v1639_v30  ;;  %v2422_v32 = vpop.f32.mrb[11].mxu0 }
 0x6ec   :  { %2426 = vmatmul.mubr.msk.f32.vlgmr.msra.gmra.mrb[12].mxu1 %vm691_vm14, %v1643_v31 }
 0x6ed   :  { %2495 = vmatpush3.bf16.msra.mxu1 %v2876_v39  ;;  %2444 = vmatprep.mubr.msk.f32.mxu1 %vm2663_vm0, %v2662_v0 }
 0x6ee   :  { %2496 = vmatprep.subr.bf16.mxu1 %v2664_v38 }
 0x6f1   :  { %2498 = vmatpush3.bf16.msra.mxu1 %v2882_v41 }
 0x6f2   :  { %2499 = vmatprep.subr.bf16.mxu1 %v2664_v38 }
 0x6f5   :  { %2501 = vmatpush3.bf16.msra.mxu1 %v2892_v45 }
 0x6f6   :  { %2502 = vmatprep.subr.bf16.mxu1 %v2664_v38 }
 0x6f9   :  { %2504 = vmatpush3.bf16.msra.mxu1 %v2902_v48 }
 0x7bf   :  { %v1713_v33 = vpop.f32.mrb[12].mxu1 }
 0x7c0   :  { %v1720_v58 = vrot.slane %v1713_v33, %v2954_v20  ;;  %v2427_v34 = vpop.f32.mrb[13].mxu1 }
 0x7c2   :  { %v1721_v39 = vsub.f32 %v3090_v12, %v1720_v58  ;;  %v1722_v35 = vsub.f32 %v3096_v14, %v1720_v58  ;;  %v1723_v59 = vsub.f32 %v3092_v13, %v1720_v58  ;;  %v1724_v41 = vsub.f32 %v3100_v16, %v1720_v58 }
 0x7c4   :  { %v1725_v36 = vmul.f32 %v1721_v39, %v1721_v39  ;;  %v1726_v61 = vmul.f32 %v1722_v35, %v1722_v35  ;;  %v1727_v37 = vmul.f32 %v1723_v59, %v1723_v59  ;;  %v1728_v45 = vmul.f32 %v1724_v41, %v1724_v41 }
 0x7c6   :  { %v1729_v38 = vsel %vm237_vm11, %v1725_v36, 0.0  ;;  %v1730_v48 = vsel %vm237_vm11, %v1727_v37, 0.0  ;;  %v1732_v1 = vsel %vm237_vm11, %v1726_v61, 0.0  ;;  %v1733_v40 = vsel %vm237_vm11, %v1728_v45, 0.0 }
 0x7c7   :  { %v1731_v42 = vadd.f32 %v1730_v48, %v1729_v38  ;;  %v1734_v44 = vadd.f32 %v1733_v40, %v1732_v1 }
 0x7c9   :  { %v1735_v46 = vsel %vm237_vm11, %v1731_v42, 0.0  ;;  %v1736_v47 = vsel %vm237_vm11, %v1734_v44, 0.0 }
 0x7ca   :  { %v1737_v50 = vadd.f32 %v1736_v47, %v1735_v46 }
 0x7cc   :  { %v1738_v51 = vrot.slane %v1737_v50, 4 }
 0x7ce   :  { %v1739_v52 = vadd.f32 %v1738_v51, %v1737_v50 }
 0x7d0   :  { %v1740_v53 = vrot.slane %v1739_v52, 2 }
 0x7d2   :  { %v1741_v54 = vadd.f32 %v1740_v53, %v1739_v52 }
 0x7d4   :  { %v1742_v55 = vrot.slane %v1741_v54, 1 }
 0x7d6   :  { %v1743_v56 = vadd.f32 %v1742_v55, %v1741_v54 }
 0x7d8   :  { %2445 = vmatmul.mubr.msk.f32.vlgmr.msra.gmra.mrb[14].mxu1 %vm237_vm11, %v1743_v56 }
 0x8ab   :  { %v1813_v57 = vpop.f32.mrb[14].mxu1 }
 0x8ac   :  { %v1817_v60 = vmul.f32 0.001953125, %v1813_v57  ;;  %v2446_v62 = vpop.f32.mrb[15].mxu1 }
 0x8ae   :  { %v1818_v63 = vadd.f32 1e-05, %v1817_v60 }
 0x8b0   :  { %2584 = vrsqrt.f32 %v1818_v63 }
 0x8ba   :  { %v2585_v3 = vpop.eup %2584 }
 0x8bb   :  { %v1820_v4 = vmul.f32 %v2585_v3, %v1553_v2 }
 0x8bd   :  { %2450 = vmatmul.mubr.msk.f32.vlgmr.msra.gmra.mrb[16].mxu0 %vm691_vm14, %v1820_v4  ;;  %v1894_v6 = vmul.f32 %v1820_v4, %v1643_v31 }
 0x8be   :  { %2453 = vmatpush3.msk.msra.mxu0 %vm695_vm13, %v2910_v49  ;;  %2454 = vmatprep.mubr.msk.f32.mxu0 %vm2663_vm0, %v2662_v0  ;;  %v1985_v0 = vld [vmem:[%s3182_s0] sm:$0xff] }
 0x8bf   :  { %v1895_v7 = vsub.f32 %v1554_v5, %v1894_v6 }
 0x8c1   :  { %2455 = vmatmul.mubr.msk.f32.vlgmr.msra.gmra.mrb[18].mxu0 %vm691_vm14, %v1895_v7 }
 0x990   :  { %v1890_v8 = vpop.f32.mrb[16].mxu0 }
 0x991   :  { %v1972_v9 = vrot.slane %v1890_v8, %v2954_v20  ;;  %v2451_v11 = vpop.f32.mrb[17].mxu0 }
 0x993   :  { %v1973_v10 = vmul.f32 %v1972_v9, %v3090_v12  ;;  %v1974_v21 = vmul.f32 %v1972_v9, %v3096_v14  ;;  %v1975_v17 = vmul.f32 %v1972_v9, %v3092_v13  ;;  %v1976_v18 = vmul.f32 %v1972_v9, %v3100_v16  ;;  %v1987_v12 = vld [vmem:[%s3182_s0 + $0x10] sm:$0xff]  ;;  %v1988_v13 = vld [vmem:[%s3182_s0 + $0x18] sm:$0xff]  ;;  %s2630_s0 = scalar_lea.vmem %s2007_s26, 512 }
 0x994   :  { %v1965_v15 = vpop.f32.mrb[18].mxu0  ;;  %p2631_p2 = scmp.ne.s32.totalorder %s2007_s26, %s2630_s0  ;;  %p2636_p4 = scmp.lt.s32.totalorder %s2630_s0, %s2630_s0 }
 0x995   :  { %v1980_v49 = vrot.slane %v1965_v15, %v2954_v20  ;;  %v2456_v19 = vpop.f32.mrb[19].mxu0 }
 0x996   :  { %p2637_p5 = por %p2636_p4, %p2635_p3 }
 0x997   :  { %v1981_v14 = vadd.f32 %v1980_v49, %v1973_v10  ;;  %v1982_v16 = vadd.f32 %v1980_v49, %v1974_v21  ;;  %v1983_v20 = vadd.f32 %v1980_v49, %v1975_v17  ;;  %v1984_v24 = vadd.f32 %v1980_v49, %v1976_v18 }
 0x998   :  { %p2638_p6 = pnand %p2637_p5, %p2631_p2 }
 0x999   :  { %v1989_v25 = vadd.f32 %v1985_v0, %v1981_v14  ;;  %v1990_v26 = vadd.f32 %v1986_v22, %v1982_v16  ;;  %v1991_v27 = vadd.f32 %v1987_v12, %v1983_v20  ;;  %v1992_v23 = vadd.f32 %v1988_v13, %v1984_v24 }
 0x99b   :  { %v1993_v28 = vmax.f32 %v1989_v25, 0.0  ;;  %v1994_v43 = vmax.f32 %v1990_v26, 0.0  ;;  %v1995_v29 = vmax.f32 %v1991_v27, 0.0  ;;  %v1996_v30 = vmax.f32 %v1992_v23, 0.0 }
 0x99d   :  { %1997 = vst.msk [vmem:[#allocation11] sm:$0xff] %vm237_vm11, %v1993_v28  ;;  %1998 = vst.msk [vmem:[#allocation11 + $0x8] sm:$0xff] %vm237_vm11, %v1994_v43 }
 0x99e   :  { %1999 = vst.msk [vmem:[#allocation11 + $0x10] sm:$0xff] %vm237_vm11, %v1995_v29  ;;  %2000 = vst.msk [vmem:[#allocation11 + $0x18] sm:$0xff] %vm237_vm11, %v1996_v30 }
 0x99f   :  { %2641 = shalt.err (!%p2638_p6)
}
 0x9a0   :  { %s2642_s29 = scalar_lea.hbm %s3191_s9, 512 }
 0x9a1   :  { %p2643_p7 = scmp.ne.s32.totalorder %s3191_s9, %s2642_s29  ;;  %p2646_p8 = scmp.lt.u32.totalorder %s2642_s29, %s3191_s9 }
 0x9a3   :  { %p2648_p9 = pnand %p2646_p8, %p2643_p7 }
 0x9a5   :  { %2651 = shalt.err (!%p2648_p9)
}
 0x9a6   :  { %s2666_s10 = smov 128   ;;  %s2667_s2 = smov 8  }
 0x9a7   :  { %2012 = dma.vmem_to_hbm [thread:$0]  %s2007_s26, 512, %s3191_s9, [#allocation8], %s2666_s10, %s2666_s10, %s2667_s2  }
 0x9a8   :  { %2656 = dma.done.wait [#allocation8], 512  }
 0x9a9   :  { %2657 = vsyncadd [#allocation8], 4294966784 }
 0x9aa   :  { %2016 = vsyncpa [#allocation7], 1 }
 0x9ab   :  { %2017 = vsyncpa [#allocation10], 1 }
 0x9ac   :  { %2018 = vsyncpa [#allocation8], 1 }

</bundles_post_ra>
